<compile_context>
chip_gen: v7x
topology: tpu7x:2x2x1
jax: 0.10.0
libtpu: 0.0.40
codegen_flags: <defaults>
</compile_context>

<pallas_src>
import jax
import jax.numpy as jnp
from jax.experimental import pallas as pl
from jax.experimental.pallas import tpu as pltpu


# --------------------------------------------------------------------------
# Parameter key orderings (kernel arg packing)
# --------------------------------------------------------------------------
TF_KEYS = ("wq", "bq", "wk", "bk", "wv", "bv", "wo", "bo",
           "g1", "be1", "w1", "b1", "w2", "b2", "g2", "be2")
# seq_len==1 aggregate layers never need wq/wk (softmax over one key == 1)
AGG_KEYS = ("wv", "bv", "wo", "bo", "g1", "be1", "w1", "b1", "w2", "b2", "g2", "be2")
ORIENT_KEYS = ("w1", "b1", "w2", "b2", "w3", "b3", "g", "be")


# --------------------------------------------------------------------------
# In-kernel building blocks (traced inside the single fused kernel)
# --------------------------------------------------------------------------
def _layer_norm(y, g, b):
    # One-pass moments: var = E[x^2] - mean^2 (halves the dependent XLU chain).
    mu = jnp.mean(y, axis=-1, keepdims=True)
    ms = jnp.mean(y * y, axis=-1, keepdims=True)
    var = ms - mu * mu
    return (y - mu) * jax.lax.rsqrt(var + 1e-5) * g + b


def _encoder_layer(x, p, scale):
    """Post-norm nn.TransformerEncoderLayer (1 head, eval mode). x: (B, T, D)."""
    Bx, T, Dm = x.shape
    xf = x.reshape(Bx * T, Dm)                       # one GEMM slab for all projections

    q = (jnp.dot(xf, p["wq"], preferred_element_type=jnp.float32) + p["bq"]) * scale
    k = jnp.dot(xf, p["wk"], preferred_element_type=jnp.float32) + p["bk"]
    v = jnp.dot(xf, p["wv"], preferred_element_type=jnp.float32) + p["bv"]
    q = q.reshape(Bx, T, Dm)
    k = k.reshape(Bx, T, Dm)
    v = v.reshape(Bx, T, Dm)

    # batched QK^T with contraction on the last dims (no explicit transpose)
    s = jnp.einsum("bqd,bkd->bqk", q, k, preferred_element_type=jnp.float32)
    s = s - jnp.max(s, axis=-1, keepdims=True)
    pexp = jnp.exp(s)
    pexp = pexp * pl.reciprocal(jnp.sum(pexp, axis=-1, keepdims=True), approx=True)
    a = jnp.einsum("bqk,bkd->bqd", pexp, v, preferred_element_type=jnp.float32)

    attn = jnp.dot(a.reshape(Bx * T, Dm), p["wo"],
                   preferred_element_type=jnp.float32) + p["bo"]
    x1 = _layer_norm(xf + attn, p["g1"], p["be1"])

    h = jnp.maximum(
        jnp.dot(x1, p["w1"], preferred_element_type=jnp.float32) + p["b1"], 0.0)
    ff = jnp.dot(h, p["w2"], preferred_element_type=jnp.float32) + p["b2"]
    return _layer_norm(x1 + ff, p["g2"], p["be2"]).reshape(Bx, T, Dm)


def _agg_layer_t1(x, p):
    """Encoder layer specialized for seq_len==1: attention output == V."""
    v = jnp.dot(x, p["wv"], preferred_element_type=jnp.float32) + p["bv"]
    attn = jnp.dot(v, p["wo"], preferred_element_type=jnp.float32) + p["bo"]
    x1 = _layer_norm(x + attn, p["g1"], p["be1"])
    h = jnp.maximum(
        jnp.dot(x1, p["w1"], preferred_element_type=jnp.float32) + p["b1"], 0.0)
    ff = jnp.dot(h, p["w2"], preferred_element_type=jnp.float32) + p["b2"]
    return _layer_norm(x1 + ff, p["g2"], p["be2"])


# --------------------------------------------------------------------------
# The single fused kernel
# --------------------------------------------------------------------------
def _make_fused_kernel(B, Ts, Tp, D, num_agg, nc):
    scale = 1.0 / (D ** 0.5)

    def kernel(*refs):
        out_ref, agg_sc = refs[-2], refs[-1]          # output, (B, 3D) VMEM scratch
        vals = [r[...] for r in refs[:-2]]
        it = iter(vals)

        s_patches = next(it)                          # (B*Ts, Ks)
        p_patches = next(it)                          # (Tp, Kp)  (modulation batch == 1)
        orient_in = next(it)                          # (B, 2)
        s_wmat = next(it); s_tokbias = next(it)       # (Ks, D), (Ts, D)
        m_wmat = next(it); m_tokbias = next(it)       # (Kp, D), (Tp, D)
        s_tf = {k: next(it) for k in TF_KEYS}
        m_tf = {k: next(it) for k in TF_KEYS}
        omlp = {k: next(it) for k in ORIENT_KEYS}
        agg_ls = [{k: next(it) for k in AGG_KEYS} for _ in range(num_agg)]
        out_w = next(it); out_b = next(it)

        # ---- sound path: patch-embed -> encoder layer -> mean over tokens
        s_tok = jnp.dot(s_patches, s_wmat, preferred_element_type=jnp.float32)
        s_tok = s_tok.reshape(B, Ts, D) + s_tokbias[None]      # bias + cpos + tpos
        s_tok = _encoder_layer(s_tok, s_tf, scale)
        s_feat = jnp.mean(s_tok, axis=1)                        # (B, D)

        # ---- modulation path (batch 1): patch-embed -> encoder -> mean -> expand
        p_tok = jnp.dot(p_patches, m_wmat, preferred_element_type=jnp.float32) + m_tokbias
        p_tok = _encoder_layer(p_tok.reshape(1, Tp, D), m_tf, scale)
        p_feat = jnp.broadcast_to(jnp.mean(p_tok, axis=1), (B, D))

        # ---- orientation MLP: Linear-ReLU-Linear-ReLU-Linear-LayerNorm
        o = jnp.maximum(
            jnp.dot(orient_in, omlp["w1"], preferred_element_type=jnp.float32) + omlp["b1"], 0.0)
        o = jnp.maximum(
            jnp.dot(o, omlp["w2"], preferred_element_type=jnp.float32) + omlp["b2"], 0.0)
        o = jnp.dot(o, omlp["w3"], preferred_element_type=jnp.float32) + omlp["b3"]
        o = _layer_norm(o, omlp["g"], omlp["be"])               # (B, D)

        # ---- aggregate: concat [sound | phi | orientation] via VMEM scratch
        agg_sc[:, 0:D] = s_feat
        agg_sc[:, D:2 * D] = p_feat
        agg_sc[:, 2 * D:3 * D] = o
        agg = agg_sc[...]                                       # (B, 3D)

        for lp in agg_ls:                                       # seq_len==1 encoder layers
            agg = _agg_layer_t1(agg, lp)

        # ---- final head: the only HBM write of the whole forward
        out_ref[...] = jnp.dot(agg, out_w, preferred_element_type=jnp.float32) + out_b

    return kernel


# --------------------------------------------------------------------------
# Wrapper: layout glue (patch extraction) + one pallas_call
# --------------------------------------------------------------------------
def _extract_patches(x, kd=3, kh=3, kw=2):
    """x: (B, C, D, H, W), kernel == stride -> non-overlapping patches."""
    B, C, Dd, H, W = x.shape
    Dp, Hp, Wp = Dd // kd, H // kh, W // kw
    T = Dp * Hp * Wp
    xp = x.reshape(B, C, Dp, kd, Hp, kh, Wp, kw)
    xp = xp.transpose(0, 2, 4, 6, 1, 3, 5, 7)        # (B, Dp, Hp, Wp, C, kd, kh, kw)
    return xp.reshape(B * T, C * kd * kh * kw), T


def forward(params, sound, phi, orientation):
    B = sound.shape[0]
    D = params["sound_pe"]["wmat"].shape[1]
    nc = params["out_w"].shape[1]

    s_patches, Ts = _extract_patches(sound)          # (B*Ts, Ks)
    p_patches, Tp = _extract_patches(phi)            # (Tp, Kp)  (phi batch == 1)

    spe, mpe = params["sound_pe"], params["mod_pe"]
    # merge Conv3d bias + channel pos-emb + time pos-emb into one (T, D) token bias
    s_tokbias = spe["b"] + spe["cpos"] + spe["tpos"][:Ts, None]
    p_tokbias = mpe["b"] + mpe["cpos"] + mpe["tpos"][:Tp, None]

    args = [s_patches, p_patches, orientation,
            spe["wmat"], s_tokbias, mpe["wmat"], p_tokbias]
    args += [params["sound_tf"][k] for k in TF_KEYS]
    args += [params["mod_tf"][k] for k in TF_KEYS]
    args += [params["orient"][k] for k in ORIENT_KEYS]
    for layer in params["agg_tf_layers"]:
        args += [layer[k] for k in AGG_KEYS]
    args += [params["out_w"], params["out_b"]]

    kernel = _make_fused_kernel(B=B, Ts=Ts, Tp=Tp, D=D,
                                num_agg=len(params["agg_tf_layers"]), nc=nc)
    return pl.pallas_call(
        kernel,
        out_shape=jax.ShapeDtypeStruct((B, nc), jnp.float32),
        scratch_shapes=[pltpu.VMEM((B, 3 * D), jnp.float32)],
    )(*args)


# --------------------------------------------------------------------------
# Deterministic synthetic parameters
# --------------------------------------------------------------------------
def init_params(key, hidden_dim=32, num_layers=1, num_coordinates=1, max_length=64):
    keys = iter(jax.random.split(key, 128))

    def nrm(shape, scale=0.05):
        return scale * jax.random.normal(next(keys), shape, dtype=jnp.float32)

    def tf_layer(d, f):
        return dict(
            wq=nrm((d, d)), bq=jnp.zeros((1, d), jnp.float32),
            wk=nrm((d, d)), bk=jnp.zeros((1, d), jnp.float32),
            wv=nrm((d, d)), bv=jnp.zeros((1, d), jnp.float32),
            wo=nrm((d, d)), bo=jnp.zeros((1, d), jnp.float32),
            g1=jnp.ones((1, d), jnp.float32), be1=jnp.zeros((1, d), jnp.float32),
            w1=nrm((d, f)), b1=jnp.zeros((1, f), jnp.float32),
            w2=nrm((f, d)), b2=jnp.zeros((1, d), jnp.float32),
            g2=jnp.ones((1, d), jnp.float32), be2=jnp.zeros((1, d), jnp.float32),
        )

    def pe_params(c, e):
        w = nrm((e, c, 3, 3, 2))                      # Conv3d weight (E, C, 3, 3, 2)
        return dict(
            wmat=w.reshape(e, c * 3 * 3 * 2).T,       # (K, E) pre-transposed at init
            b=nrm((e,), 0.01).reshape(1, e),          # Conv3d bias
            cpos=nrm((e,)).reshape(1, e),             # channel_positional_embedding
            tpos=nrm((max_length,)),                  # time_positional_embedding
        )

    h = hidden_dim
    return dict(
        sound_pe=pe_params(8, h),
        sound_tf=tf_layer(h, h),
        mod_pe=pe_params(4, h),
        mod_tf=tf_layer(h, h),
        orient=dict(
            w1=nrm((2, h // 4)), b1=jnp.zeros((1, h // 4), jnp.float32),
            w2=nrm((h // 4, h // 2)), b2=jnp.zeros((1, h // 2), jnp.float32),
            w3=nrm((h // 2, h)), b3=jnp.zeros((1, h), jnp.float32),
            g=jnp.ones((1, h), jnp.float32), be=jnp.zeros((1, h), jnp.float32),
        ),
        agg_tf_layers=[tf_layer(3 * h, 3 * h) for _ in range(num_layers)],
        out_w=nrm((3 * h, num_coordinates)),
        out_b=jnp.zeros((1, num_coordinates), jnp.float32),
    )


# TODO(synk): dropout layers are eval-mode identities (training-mode dropout not implemented).


if __name__ == "__main__":
    key = jax.random.PRNGKey(0)
    kp, ks, km, ko = jax.random.split(key, 4)

    hidden_dim = 32
    params = init_params(kp, hidden_dim=hidden_dim, num_layers=1, num_coordinates=1)

    # Conv3d(kernel=stride=(3,3,2)) on D=3,H=6,W=8 gives T = 1*2*4 = 8 tokens.
    sound = jax.random.normal(ks, (2, 8, 3, 6, 8), dtype=jnp.float32)     # (B, 8, D, H, W)
    phi = jax.random.normal(km, (1, 4, 3, 6, 8), dtype=jnp.float32)       # batch-1 modulation
    orientation = jax.random.normal(ko, (2, 2), dtype=jnp.float32)        # (B, 2)

    out = jax.jit(forward)(params, sound, phi, orientation)
    out = jax.block_until_ready(out)

    assert out.shape == (2, 1), out.shape
    assert bool(jnp.all(jnp.isfinite(out)))
    print("KERNEL_OK")
</pallas_src>

<mosaic_0001>
module attributes {stable_mosaic.version = 11 : i64} {
  func.func @kernel(%arg0: memref<16x144xf32, #tpu.memory_space<vmem>>, %arg1: memref<8x72xf32, #tpu.memory_space<vmem>>, %arg2: memref<2x2xf32, #tpu.memory_space<vmem>>, %arg3: memref<144x32xf32, #tpu.memory_space<vmem>>, %arg4: memref<8x32xf32, #tpu.memory_space<vmem>>, %arg5: memref<72x32xf32, #tpu.memory_space<vmem>>, %arg6: memref<8x32xf32, #tpu.memory_space<vmem>>, %arg7: memref<32x32xf32, #tpu.memory_space<vmem>>, %arg8: memref<1x32xf32, #tpu.memory_space<vmem>>, %arg9: memref<32x32xf32, #tpu.memory_space<vmem>>, %arg10: memref<1x32xf32, #tpu.memory_space<vmem>>, %arg11: memref<32x32xf32, #tpu.memory_space<vmem>>, %arg12: memref<1x32xf32, #tpu.memory_space<vmem>>, %arg13: memref<32x32xf32, #tpu.memory_space<vmem>>, %arg14: memref<1x32xf32, #tpu.memory_space<vmem>>, %arg15: memref<1x32xf32, #tpu.memory_space<vmem>>, %arg16: memref<1x32xf32, #tpu.memory_space<vmem>>, %arg17: memref<32x32xf32, #tpu.memory_space<vmem>>, %arg18: memref<1x32xf32, #tpu.memory_space<vmem>>, %arg19: memref<32x32xf32, #tpu.memory_space<vmem>>, %arg20: memref<1x32xf32, #tpu.memory_space<vmem>>, %arg21: memref<1x32xf32, #tpu.memory_space<vmem>>, %arg22: memref<1x32xf32, #tpu.memory_space<vmem>>, %arg23: memref<32x32xf32, #tpu.memory_space<vmem>>, %arg24: memref<1x32xf32, #tpu.memory_space<vmem>>, %arg25: memref<32x32xf32, #tpu.memory_space<vmem>>, %arg26: memref<1x32xf32, #tpu.memory_space<vmem>>, %arg27: memref<32x32xf32, #tpu.memory_space<vmem>>, %arg28: memref<1x32xf32, #tpu.memory_space<vmem>>, %arg29: memref<32x32xf32, #tpu.memory_space<vmem>>, %arg30: memref<1x32xf32, #tpu.memory_space<vmem>>, %arg31: memref<1x32xf32, #tpu.memory_space<vmem>>, %arg32: memref<1x32xf32, #tpu.memory_space<vmem>>, %arg33: memref<32x32xf32, #tpu.memory_space<vmem>>, %arg34: memref<1x32xf32, #tpu.memory_space<vmem>>, %arg35: memref<32x32xf32, #tpu.memory_space<vmem>>, %arg36: memref<1x32xf32, #tpu.memory_space<vmem>>, %arg37: memref<1x32xf32, #tpu.memory_space<vmem>>, %arg38: memref<1x32xf32, #tpu.memory_space<vmem>>, %arg39: memref<2x8xf32, #tpu.memory_space<vmem>>, %arg40: memref<1x8xf32, #tpu.memory_space<vmem>>, %arg41: memref<8x16xf32, #tpu.memory_space<vmem>>, %arg42: memref<1x16xf32, #tpu.memory_space<vmem>>, %arg43: memref<16x32xf32, #tpu.memory_space<vmem>>, %arg44: memref<1x32xf32, #tpu.memory_space<vmem>>, %arg45: memref<1x32xf32, #tpu.memory_space<vmem>>, %arg46: memref<1x32xf32, #tpu.memory_space<vmem>>, %arg47: memref<96x96xf32, #tpu.memory_space<vmem>>, %arg48: memref<1x96xf32, #tpu.memory_space<vmem>>, %arg49: memref<96x96xf32, #tpu.memory_space<vmem>>, %arg50: memref<1x96xf32, #tpu.memory_space<vmem>>, %arg51: memref<1x96xf32, #tpu.memory_space<vmem>>, %arg52: memref<1x96xf32, #tpu.memory_space<vmem>>, %arg53: memref<96x96xf32, #tpu.memory_space<vmem>>, %arg54: memref<1x96xf32, #tpu.memory_space<vmem>>, %arg55: memref<96x96xf32, #tpu.memory_space<vmem>>, %arg56: memref<1x96xf32, #tpu.memory_space<vmem>>, %arg57: memref<1x96xf32, #tpu.memory_space<vmem>>, %arg58: memref<1x96xf32, #tpu.memory_space<vmem>>, %arg59: memref<96x1xf32, #tpu.memory_space<vmem>>, %arg60: memref<1x1xf32, #tpu.memory_space<vmem>>, %arg61: memref<2x1xf32, #tpu.memory_space<vmem>>, %arg62: memref<2x96xf32, #tpu.memory_space<vmem>>) attributes {dimension_semantics = [], scalar_prefetch = 0 : i64, scratch_operands = 1 : i64, tpu.core_type = #tpu.core_type<tc>} {
    %c0 = arith.constant 0 : index
    %c0_0 = arith.constant 0 : index
    %0 = vector.load %arg0[%c0, %c0_0] : memref<16x144xf32, #tpu.memory_space<vmem>>, vector<16x144xf32>
    %c0_1 = arith.constant 0 : index
    %c0_2 = arith.constant 0 : index
    %1 = vector.load %arg1[%c0_1, %c0_2] : memref<8x72xf32, #tpu.memory_space<vmem>>, vector<8x72xf32>
    %c0_3 = arith.constant 0 : index
    %c0_4 = arith.constant 0 : index
    %2 = vector.load %arg2[%c0_3, %c0_4] : memref<2x2xf32, #tpu.memory_space<vmem>>, vector<2x2xf32>
    %c0_5 = arith.constant 0 : index
    %c0_6 = arith.constant 0 : index
    %3 = vector.load %arg3[%c0_5, %c0_6] : memref<144x32xf32, #tpu.memory_space<vmem>>, vector<144x32xf32>
    %c0_7 = arith.constant 0 : index
    %c0_8 = arith.constant 0 : index
    %4 = vector.load %arg4[%c0_7, %c0_8] : memref<8x32xf32, #tpu.memory_space<vmem>>, vector<8x32xf32>
    %c0_9 = arith.constant 0 : index
    %c0_10 = arith.constant 0 : index
    %5 = vector.load %arg5[%c0_9, %c0_10] : memref<72x32xf32, #tpu.memory_space<vmem>>, vector<72x32xf32>
    %c0_11 = arith.constant 0 : index
    %c0_12 = arith.constant 0 : index
    %6 = vector.load %arg6[%c0_11, %c0_12] : memref<8x32xf32, #tpu.memory_space<vmem>>, vector<8x32xf32>
    %c0_13 = arith.constant 0 : index
    %c0_14 = arith.constant 0 : index
    %7 = vector.load %arg7[%c0_13, %c0_14] : memref<32x32xf32, #tpu.memory_space<vmem>>, vector<32x32xf32>
    %c0_15 = arith.constant 0 : index
    %c0_16 = arith.constant 0 : index
    %8 = vector.load %arg8[%c0_15, %c0_16] : memref<1x32xf32, #tpu.memory_space<vmem>>, vector<1x32xf32>
    %c0_17 = arith.constant 0 : index
    %c0_18 = arith.constant 0 : index
    %9 = vector.load %arg9[%c0_17, %c0_18] : memref<32x32xf32, #tpu.memory_space<vmem>>, vector<32x32xf32>
    %c0_19 = arith.constant 0 : index
    %c0_20 = arith.constant 0 : index
    %10 = vector.load %arg10[%c0_19, %c0_20] : memref<1x32xf32, #tpu.memory_space<vmem>>, vector<1x32xf32>
    %c0_21 = arith.constant 0 : index
    %c0_22 = arith.constant 0 : index
    %11 = vector.load %arg11[%c0_21, %c0_22] : memref<32x32xf32, #tpu.memory_space<vmem>>, vector<32x32xf32>
    %c0_23 = arith.constant 0 : index
    %c0_24 = arith.constant 0 : index
    %12 = vector.load %arg12[%c0_23, %c0_24] : memref<1x32xf32, #tpu.memory_space<vmem>>, vector<1x32xf32>
    %c0_25 = arith.constant 0 : index
    %c0_26 = arith.constant 0 : index
    %13 = vector.load %arg13[%c0_25, %c0_26] : memref<32x32xf32, #tpu.memory_space<vmem>>, vector<32x32xf32>
    %c0_27 = arith.constant 0 : index
    %c0_28 = arith.constant 0 : index
    %14 = vector.load %arg14[%c0_27, %c0_28] : memref<1x32xf32, #tpu.memory_space<vmem>>, vector<1x32xf32>
    %c0_29 = arith.constant 0 : index
    %c0_30 = arith.constant 0 : index
    %15 = vector.load %arg15[%c0_29, %c0_30] : memref<1x32xf32, #tpu.memory_space<vmem>>, vector<1x32xf32>
    %c0_31 = arith.constant 0 : index
    %c0_32 = arith.constant 0 : index
    %16 = vector.load %arg16[%c0_31, %c0_32] : memref<1x32xf32, #tpu.memory_space<vmem>>, vector<1x32xf32>
    %c0_33 = arith.constant 0 : index
    %c0_34 = arith.constant 0 : index
    %17 = vector.load %arg17[%c0_33, %c0_34] : memref<32x32xf32, #tpu.memory_space<vmem>>, vector<32x32xf32>
    %c0_35 = arith.constant 0 : index
    %c0_36 = arith.constant 0 : index
    %18 = vector.load %arg18[%c0_35, %c0_36] : memref<1x32xf32, #tpu.memory_space<vmem>>, vector<1x32xf32>
    %c0_37 = arith.constant 0 : index
    %c0_38 = arith.constant 0 : index
    %19 = vector.load %arg19[%c0_37, %c0_38] : memref<32x32xf32, #tpu.memory_space<vmem>>, vector<32x32xf32>
    %c0_39 = arith.constant 0 : index
    %c0_40 = arith.constant 0 : index
    %20 = vector.load %arg20[%c0_39, %c0_40] : memref<1x32xf32, #tpu.memory_space<vmem>>, vector<1x32xf32>
    %c0_41 = arith.constant 0 : index
    %c0_42 = arith.constant 0 : index
    %21 = vector.load %arg21[%c0_41, %c0_42] : memref<1x32xf32, #tpu.memory_space<vmem>>, vector<1x32xf32>
    %c0_43 = arith.constant 0 : index
    %c0_44 = arith.constant 0 : index
    %22 = vector.load %arg22[%c0_43, %c0_44] : memref<1x32xf32, #tpu.memory_space<vmem>>, vector<1x32xf32>
    %c0_45 = arith.constant 0 : index
    %c0_46 = arith.constant 0 : index
    %23 = vector.load %arg23[%c0_45, %c0_46] : memref<32x32xf32, #tpu.memory_space<vmem>>, vector<32x32xf32>
    %c0_47 = arith.constant 0 : index
    %c0_48 = arith.constant 0 : index
    %24 = vector.load %arg24[%c0_47, %c0_48] : memref<1x32xf32, #tpu.memory_space<vmem>>, vector<1x32xf32>
    %c0_49 = arith.constant 0 : index
    %c0_50 = arith.constant 0 : index
    %25 = vector.load %arg25[%c0_49, %c0_50] : memref<32x32xf32, #tpu.memory_space<vmem>>, vector<32x32xf32>
    %c0_51 = arith.constant 0 : index
    %c0_52 = arith.constant 0 : index
    %26 = vector.load %arg26[%c0_51, %c0_52] : memref<1x32xf32, #tpu.memory_space<vmem>>, vector<1x32xf32>
    %c0_53 = arith.constant 0 : index
    %c0_54 = arith.constant 0 : index
    %27 = vector.load %arg27[%c0_53, %c0_54] : memref<32x32xf32, #tpu.memory_space<vmem>>, vector<32x32xf32>
    %c0_55 = arith.constant 0 : index
    %c0_56 = arith.constant 0 : index
    %28 = vector.load %arg28[%c0_55, %c0_56] : memref<1x32xf32, #tpu.memory_space<vmem>>, vector<1x32xf32>
    %c0_57 = arith.constant 0 : index
    %c0_58 = arith.constant 0 : index
    %29 = vector.load %arg29[%c0_57, %c0_58] : memref<32x32xf32, #tpu.memory_space<vmem>>, vector<32x32xf32>
    %c0_59 = arith.constant 0 : index
    %c0_60 = arith.constant 0 : index
    %30 = vector.load %arg30[%c0_59, %c0_60] : memref<1x32xf32, #tpu.memory_space<vmem>>, vector<1x32xf32>
    %c0_61 = arith.constant 0 : index
    %c0_62 = arith.constant 0 : index
    %31 = vector.load %arg31[%c0_61, %c0_62] : memref<1x32xf32, #tpu.memory_space<vmem>>, vector<1x32xf32>
    %c0_63 = arith.constant 0 : index
    %c0_64 = arith.constant 0 : index
    %32 = vector.load %arg32[%c0_63, %c0_64] : memref<1x32xf32, #tpu.memory_space<vmem>>, vector<1x32xf32>
    %c0_65 = arith.constant 0 : index
    %c0_66 = arith.constant 0 : index
    %33 = vector.load %arg33[%c0_65, %c0_66] : memref<32x32xf32, #tpu.memory_space<vmem>>, vector<32x32xf32>
    %c0_67 = arith.constant 0 : index
    %c0_68 = arith.constant 0 : index
    %34 = vector.load %arg34[%c0_67, %c0_68] : memref<1x32xf32, #tpu.memory_space<vmem>>, vector<1x32xf32>
    %c0_69 = arith.constant 0 : index
    %c0_70 = arith.constant 0 : index
    %35 = vector.load %arg35[%c0_69, %c0_70] : memref<32x32xf32, #tpu.memory_space<vmem>>, vector<32x32xf32>
    %c0_71 = arith.constant 0 : index
    %c0_72 = arith.constant 0 : index
    %36 = vector.load %arg36[%c0_71, %c0_72] : memref<1x32xf32, #tpu.memory_space<vmem>>, vector<1x32xf32>
    %c0_73 = arith.constant 0 : index
    %c0_74 = arith.constant 0 : index
    %37 = vector.load %arg37[%c0_73, %c0_74] : memref<1x32xf32, #tpu.memory_space<vmem>>, vector<1x32xf32>
    %c0_75 = arith.constant 0 : index
    %c0_76 = arith.constant 0 : index
    %38 = vector.load %arg38[%c0_75, %c0_76] : memref<1x32xf32, #tpu.memory_space<vmem>>, vector<1x32xf32>
    %c0_77 = arith.constant 0 : index
    %c0_78 = arith.constant 0 : index
    %39 = vector.load %arg39[%c0_77, %c0_78] : memref<2x8xf32, #tpu.memory_space<vmem>>, vector<2x8xf32>
    %c0_79 = arith.constant 0 : index
    %c0_80 = arith.constant 0 : index
    %40 = vector.load %arg40[%c0_79, %c0_80] : memref<1x8xf32, #tpu.memory_space<vmem>>, vector<1x8xf32>
    %c0_81 = arith.constant 0 : index
    %c0_82 = arith.constant 0 : index
    %41 = vector.load %arg41[%c0_81, %c0_82] : memref<8x16xf32, #tpu.memory_space<vmem>>, vector<8x16xf32>
    %c0_83 = arith.constant 0 : index
    %c0_84 = arith.constant 0 : index
    %42 = vector.load %arg42[%c0_83, %c0_84] : memref<1x16xf32, #tpu.memory_space<vmem>>, vector<1x16xf32>
    %c0_85 = arith.constant 0 : index
    %c0_86 = arith.constant 0 : index
    %43 = vector.load %arg43[%c0_85, %c0_86] : memref<16x32xf32, #tpu.memory_space<vmem>>, vector<16x32xf32>
    %c0_87 = arith.constant 0 : index
    %c0_88 = arith.constant 0 : index
    %44 = vector.load %arg44[%c0_87, %c0_88] : memref<1x32xf32, #tpu.memory_space<vmem>>, vector<1x32xf32>
    %c0_89 = arith.constant 0 : index
    %c0_90 = arith.constant 0 : index
    %45 = vector.load %arg45[%c0_89, %c0_90] : memref<1x32xf32, #tpu.memory_space<vmem>>, vector<1x32xf32>
    %c0_91 = arith.constant 0 : index
    %c0_92 = arith.constant 0 : index
    %46 = vector.load %arg46[%c0_91, %c0_92] : memref<1x32xf32, #tpu.memory_space<vmem>>, vector<1x32xf32>
    %c0_93 = arith.constant 0 : index
    %c0_94 = arith.constant 0 : index
    %47 = vector.load %arg47[%c0_93, %c0_94] : memref<96x96xf32, #tpu.memory_space<vmem>>, vector<96x96xf32>
    %c0_95 = arith.constant 0 : index
    %c0_96 = arith.constant 0 : index
    %48 = vector.load %arg48[%c0_95, %c0_96] : memref<1x96xf32, #tpu.memory_space<vmem>>, vector<1x96xf32>
    %c0_97 = arith.constant 0 : index
    %c0_98 = arith.constant 0 : index
    %49 = vector.load %arg49[%c0_97, %c0_98] : memref<96x96xf32, #tpu.memory_space<vmem>>, vector<96x96xf32>
    %c0_99 = arith.constant 0 : index
    %c0_100 = arith.constant 0 : index
    %50 = vector.load %arg50[%c0_99, %c0_100] : memref<1x96xf32, #tpu.memory_space<vmem>>, vector<1x96xf32>
    %c0_101 = arith.constant 0 : index
    %c0_102 = arith.constant 0 : index
    %51 = vector.load %arg51[%c0_101, %c0_102] : memref<1x96xf32, #tpu.memory_space<vmem>>, vector<1x96xf32>
    %c0_103 = arith.constant 0 : index
    %c0_104 = arith.constant 0 : index
    %52 = vector.load %arg52[%c0_103, %c0_104] : memref<1x96xf32, #tpu.memory_space<vmem>>, vector<1x96xf32>
    %c0_105 = arith.constant 0 : index
    %c0_106 = arith.constant 0 : index
    %53 = vector.load %arg53[%c0_105, %c0_106] : memref<96x96xf32, #tpu.memory_space<vmem>>, vector<96x96xf32>
    %c0_107 = arith.constant 0 : index
    %c0_108 = arith.constant 0 : index
    %54 = vector.load %arg54[%c0_107, %c0_108] : memref<1x96xf32, #tpu.memory_space<vmem>>, vector<1x96xf32>
    %c0_109 = arith.constant 0 : index
    %c0_110 = arith.constant 0 : index
    %55 = vector.load %arg55[%c0_109, %c0_110] : memref<96x96xf32, #tpu.memory_space<vmem>>, vector<96x96xf32>
    %c0_111 = arith.constant 0 : index
    %c0_112 = arith.constant 0 : index
    %56 = vector.load %arg56[%c0_111, %c0_112] : memref<1x96xf32, #tpu.memory_space<vmem>>, vector<1x96xf32>
    %c0_113 = arith.constant 0 : index
    %c0_114 = arith.constant 0 : index
    %57 = vector.load %arg57[%c0_113, %c0_114] : memref<1x96xf32, #tpu.memory_space<vmem>>, vector<1x96xf32>
    %c0_115 = arith.constant 0 : index
    %c0_116 = arith.constant 0 : index
    %58 = vector.load %arg58[%c0_115, %c0_116] : memref<1x96xf32, #tpu.memory_space<vmem>>, vector<1x96xf32>
    %c0_117 = arith.constant 0 : index
    %c0_118 = arith.constant 0 : index
    %59 = vector.load %arg59[%c0_117, %c0_118] : memref<96x1xf32, #tpu.memory_space<vmem>>, vector<96x1xf32>
    %c0_119 = arith.constant 0 : index
    %c0_120 = arith.constant 0 : index
    %60 = vector.load %arg60[%c0_119, %c0_120] : memref<1x1xf32, #tpu.memory_space<vmem>>, vector<1x1xf32>
    %cst = arith.constant dense<0.000000e+00> : vector<16x32xf32>
    %61 = tpu.matmul %0, %3, %cst {dimension_numbers = #tpu.dot_dimension_numbers<[1], [0], [0], [1], [0, 0, 1, 1], [], []>} : vector<16x144xf32>, vector<144x32xf32>, vector<16x32xf32> -> vector<16x32xf32>
    %62 = vector.shape_cast %61 : vector<16x32xf32> to vector<2x8x32xf32>
    %63 = vector.shape_cast %4 : vector<8x32xf32> to vector<1x8x32xf32>
    %64 = vector.broadcast %63 : vector<1x8x32xf32> to vector<2x8x32xf32>
    %65 = arith.addf %62, %64 : vector<2x8x32xf32>
    %66 = vector.shape_cast %65 : vector<2x8x32xf32> to vector<16x32xf32>
    %cst_121 = arith.constant dense<0.000000e+00> : vector<16x32xf32>
    %67 = tpu.matmul %66, %7, %cst_121 {dimension_numbers = #tpu.dot_dimension_numbers<[1], [0], [0], [1], [0, 0, 1, 1], [], []>} : vector<16x32xf32>, vector<32x32xf32>, vector<16x32xf32> -> vector<16x32xf32>
    %68 = vector.broadcast %8 : vector<1x32xf32> to vector<16x32xf32>
    %69 = arith.addf %67, %68 : vector<16x32xf32>
    %cst_122 = arith.constant 0.176776692 : f32
    %70 = vector.broadcast %cst_122 : f32 to vector<16x32xf32>
    %71 = arith.mulf %69, %70 : vector<16x32xf32>
    %cst_123 = arith.constant dense<0.000000e+00> : vector<16x32xf32>
    %72 = tpu.matmul %66, %9, %cst_123 {dimension_numbers = #tpu.dot_dimension_numbers<[1], [0], [0], [1], [0, 0, 1, 1], [], []>} : vector<16x32xf32>, vector<32x32xf32>, vector<16x32xf32> -> vector<16x32xf32>
    %73 = vector.broadcast %10 : vector<1x32xf32> to vector<16x32xf32>
    %74 = arith.addf %72, %73 : vector<16x32xf32>
    %cst_124 = arith.constant dense<0.000000e+00> : vector<16x32xf32>
    %75 = tpu.matmul %66, %11, %cst_124 {dimension_numbers = #tpu.dot_dimension_numbers<[1], [0], [0], [1], [0, 0, 1, 1], [], []>} : vector<16x32xf32>, vector<32x32xf32>, vector<16x32xf32> -> vector<16x32xf32>
    %76 = vector.broadcast %12 : vector<1x32xf32> to vector<16x32xf32>
    %77 = arith.addf %75, %76 : vector<16x32xf32>
    %78 = vector.shape_cast %71 : vector<16x32xf32> to vector<2x8x32xf32>
    %79 = vector.shape_cast %74 : vector<16x32xf32> to vector<2x8x32xf32>
    %80 = vector.shape_cast %77 : vector<16x32xf32> to vector<2x8x32xf32>
    "tpu.trace_start"() <{level = 10 : i32, message = "bqd,bkd->bqk"}> : () -> ()
    %cst_125 = arith.constant dense<0.000000e+00> : vector<2x8x8xf32>
    %81 = tpu.matmul %78, %79, %cst_125 {dimension_numbers = #tpu.dot_dimension_numbers<[2], [2], [1], [1], [0, 0, 0, 1, 1, 1], [0], [0]>} : vector<2x8x32xf32>, vector<2x8x32xf32>, vector<2x8x8xf32> -> vector<2x8x8xf32>
    "tpu.trace_stop"() : () -> ()
    %cst_126 = arith.constant dense<0xFF800000> : vector<2x8xf32>
    %82 = vector.multi_reduction <maximumf>, %81, %cst_126 [2] : vector<2x8x8xf32> to vector<2x8xf32>
    %83 = vector.shape_cast %82 : vector<2x8xf32> to vector<2x8x1xf32>
    %84 = vector.broadcast %83 : vector<2x8x1xf32> to vector<2x8x8xf32>
    %85 = arith.subf %81, %84 : vector<2x8x8xf32>
    %86 = math.exp %85 : vector<2x8x8xf32>
    %cst_127 = arith.constant dense<0.000000e+00> : vector<2x8xf32>
    %87 = vector.multi_reduction <add>, %86, %cst_127 [2] : vector<2x8x8xf32> to vector<2x8xf32>
    %88 = vector.shape_cast %87 : vector<2x8xf32> to vector<2x8x1xf32>
    %89 = tpu.reciprocal %88 {approx = true} : vector<2x8x1xf32> -> vector<2x8x1xf32>
    %90 = vector.broadcast %89 : vector<2x8x1xf32> to vector<2x8x8xf32>
    %91 = arith.mulf %86, %90 : vector<2x8x8xf32>
    "tpu.trace_start"() <{level = 10 : i32, message = "bqk,bkd->bqd"}> : () -> ()
    %cst_128 = arith.constant dense<0.000000e+00> : vector<2x8x32xf32>
    %92 = tpu.matmul %91, %80, %cst_128 {dimension_numbers = #tpu.dot_dimension_numbers<[2], [1], [1], [2], [0, 0, 0, 1, 1, 2], [0], [0]>} : vector<2x8x8xf32>, vector<2x8x32xf32>, vector<2x8x32xf32> -> vector<2x8x32xf32>
    "tpu.trace_stop"() : () -> ()
    %93 = vector.shape_cast %92 : vector<2x8x32xf32> to vector<16x32xf32>
    %cst_129 = arith.constant dense<0.000000e+00> : vector<16x32xf32>
    %94 = tpu.matmul %93, %13, %cst_129 {dimension_numbers = #tpu.dot_dimension_numbers<[1], [0], [0], [1], [0, 0, 1, 1], [], []>} : vector<16x32xf32>, vector<32x32xf32>, vector<16x32xf32> -> vector<16x32xf32>
    %95 = vector.broadcast %14 : vector<1x32xf32> to vector<16x32xf32>
    %96 = arith.addf %94, %95 : vector<16x32xf32>
    %97 = arith.addf %66, %96 : vector<16x32xf32>
    %cst_130 = arith.constant dense<0.000000e+00> : vector<16xf32>
    %98 = vector.multi_reduction <add>, %97, %cst_130 [1] : vector<16x32xf32> to vector<16xf32>
    %99 = vector.shape_cast %98 : vector<16xf32> to vector<16x1xf32>
    %cst_131 = arith.constant 3.200000e+01 : f32
    %100 = vector.broadcast %cst_131 : f32 to vector<16x1xf32>
    %101 = arith.divf %99, %100 : vector<16x1xf32>
    %102 = arith.mulf %97, %97 : vector<16x32xf32>
    %cst_132 = arith.constant dense<0.000000e+00> : vector<16xf32>
    %103 = vector.multi_reduction <add>, %102, %cst_132 [1] : vector<16x32xf32> to vector<16xf32>
    %104 = vector.shape_cast %103 : vector<16xf32> to vector<16x1xf32>
    %cst_133 = arith.constant 3.200000e+01 : f32
    %105 = vector.broadcast %cst_133 : f32 to vector<16x1xf32>
    %106 = arith.divf %104, %105 : vector<16x1xf32>
    %107 = arith.mulf %101, %101 : vector<16x1xf32>
    %108 = arith.subf %106, %107 : vector<16x1xf32>
    %109 = vector.broadcast %101 : vector<16x1xf32> to vector<16x32xf32>
    %110 = arith.subf %97, %109 : vector<16x32xf32>
    %cst_134 = arith.constant 9.99999974E-6 : f32
    %111 = vector.broadcast %cst_134 : f32 to vector<16x1xf32>
    %112 = arith.addf %108, %111 : vector<16x1xf32>
    %113 = math.rsqrt %112 : vector<16x1xf32>
    %114 = vector.broadcast %113 : vector<16x1xf32> to vector<16x32xf32>
    %115 = arith.mulf %110, %114 : vector<16x32xf32>
    %116 = vector.broadcast %15 : vector<1x32xf32> to vector<16x32xf32>
    %117 = arith.mulf %115, %116 : vector<16x32xf32>
    %118 = vector.broadcast %16 : vector<1x32xf32> to vector<16x32xf32>
    %119 = arith.addf %117, %118 : vector<16x32xf32>
    %cst_135 = arith.constant dense<0.000000e+00> : vector<16x32xf32>
    %120 = tpu.matmul %119, %17, %cst_135 {dimension_numbers = #tpu.dot_dimension_numbers<[1], [0], [0], [1], [0, 0, 1, 1], [], []>} : vector<16x32xf32>, vector<32x32xf32>, vector<16x32xf32> -> vector<16x32xf32>
    %121 = vector.broadcast %18 : vector<1x32xf32> to vector<16x32xf32>
    %122 = arith.addf %120, %121 : vector<16x32xf32>
    %cst_136 = arith.constant 0.000000e+00 : f32
    %123 = vector.broadcast %cst_136 : f32 to vector<16x32xf32>
    %124 = arith.maximumf %122, %123 : vector<16x32xf32>
    %cst_137 = arith.constant dense<0.000000e+00> : vector<16x32xf32>
    %125 = tpu.matmul %124, %19, %cst_137 {dimension_numbers = #tpu.dot_dimension_numbers<[1], [0], [0], [1], [0, 0, 1, 1], [], []>} : vector<16x32xf32>, vector<32x32xf32>, vector<16x32xf32> -> vector<16x32xf32>
    %126 = vector.broadcast %20 : vector<1x32xf32> to vector<16x32xf32>
    %127 = arith.addf %125, %126 : vector<16x32xf32>
    %128 = arith.addf %119, %127 : vector<16x32xf32>
    %cst_138 = arith.constant dense<0.000000e+00> : vector<16xf32>
    %129 = vector.multi_reduction <add>, %128, %cst_138 [1] : vector<16x32xf32> to vector<16xf32>
    %130 = vector.shape_cast %129 : vector<16xf32> to vector<16x1xf32>
    %cst_139 = arith.constant 3.200000e+01 : f32
    %131 = vector.broadcast %cst_139 : f32 to vector<16x1xf32>
    %132 = arith.divf %130, %131 : vector<16x1xf32>
    %133 = arith.mulf %128, %128 : vector<16x32xf32>
    %cst_140 = arith.constant dense<0.000000e+00> : vector<16xf32>
    %134 = vector.multi_reduction <add>, %133, %cst_140 [1] : vector<16x32xf32> to vector<16xf32>
    %135 = vector.shape_cast %134 : vector<16xf32> to vector<16x1xf32>
    %cst_141 = arith.constant 3.200000e+01 : f32
    %136 = vector.broadcast %cst_141 : f32 to vector<16x1xf32>
    %137 = arith.divf %135, %136 : vector<16x1xf32>
    %138 = arith.mulf %132, %132 : vector<16x1xf32>
    %139 = arith.subf %137, %138 : vector<16x1xf32>
    %140 = vector.broadcast %132 : vector<16x1xf32> to vector<16x32xf32>
    %141 = arith.subf %128, %140 : vector<16x32xf32>
    %cst_142 = arith.constant 9.99999974E-6 : f32
    %142 = vector.broadcast %cst_142 : f32 to vector<16x1xf32>
    %143 = arith.addf %139, %142 : vector<16x1xf32>
    %144 = math.rsqrt %143 : vector<16x1xf32>
    %145 = vector.broadcast %144 : vector<16x1xf32> to vector<16x32xf32>
    %146 = arith.mulf %141, %145 : vector<16x32xf32>
    %147 = vector.broadcast %21 : vector<1x32xf32> to vector<16x32xf32>
    %148 = arith.mulf %146, %147 : vector<16x32xf32>
    %149 = vector.broadcast %22 : vector<1x32xf32> to vector<16x32xf32>
    %150 = arith.addf %148, %149 : vector<16x32xf32>
    %151 = vector.shape_cast %150 : vector<16x32xf32> to vector<2x8x32xf32>
    %cst_143 = arith.constant dense<0.000000e+00> : vector<2x32xf32>
    %152 = vector.multi_reduction <add>, %151, %cst_143 [1] : vector<2x8x32xf32> to vector<2x32xf32>
    %cst_144 = arith.constant 8.000000e+00 : f32
    %153 = vector.broadcast %cst_144 : f32 to vector<2x32xf32>
    %154 = arith.divf %152, %153 : vector<2x32xf32>
    %cst_145 = arith.constant dense<0.000000e+00> : vector<8x32xf32>
    %155 = tpu.matmul %1, %5, %cst_145 {dimension_numbers = #tpu.dot_dimension_numbers<[1], [0], [0], [1], [0, 0, 1, 1], [], []>} : vector<8x72xf32>, vector<72x32xf32>, vector<8x32xf32> -> vector<8x32xf32>
    %156 = arith.addf %155, %6 : vector<8x32xf32>
    %157 = vector.shape_cast %156 : vector<8x32xf32> to vector<1x8x32xf32>
    %158 = vector.shape_cast %157 : vector<1x8x32xf32> to vector<8x32xf32>
    %cst_146 = arith.constant dense<0.000000e+00> : vector<8x32xf32>
    %159 = tpu.matmul %158, %23, %cst_146 {dimension_numbers = #tpu.dot_dimension_numbers<[1], [0], [0], [1], [0, 0, 1, 1], [], []>} : vector<8x32xf32>, vector<32x32xf32>, vector<8x32xf32> -> vector<8x32xf32>
    %160 = vector.broadcast %24 : vector<1x32xf32> to vector<8x32xf32>
    %161 = arith.addf %159, %160 : vector<8x32xf32>
    %cst_147 = arith.constant 0.176776692 : f32
    %162 = vector.broadcast %cst_147 : f32 to vector<8x32xf32>
    %163 = arith.mulf %161, %162 : vector<8x32xf32>
    %cst_148 = arith.constant dense<0.000000e+00> : vector<8x32xf32>
    %164 = tpu.matmul %158, %25, %cst_148 {dimension_numbers = #tpu.dot_dimension_numbers<[1], [0], [0], [1], [0, 0, 1, 1], [], []>} : vector<8x32xf32>, vector<32x32xf32>, vector<8x32xf32> -> vector<8x32xf32>
    %165 = vector.broadcast %26 : vector<1x32xf32> to vector<8x32xf32>
    %166 = arith.addf %164, %165 : vector<8x32xf32>
    %cst_149 = arith.constant dense<0.000000e+00> : vector<8x32xf32>
    %167 = tpu.matmul %158, %27, %cst_149 {dimension_numbers = #tpu.dot_dimension_numbers<[1], [0], [0], [1], [0, 0, 1, 1], [], []>} : vector<8x32xf32>, vector<32x32xf32>, vector<8x32xf32> -> vector<8x32xf32>
    %168 = vector.broadcast %28 : vector<1x32xf32> to vector<8x32xf32>
    %169 = arith.addf %167, %168 : vector<8x32xf32>
    %170 = vector.shape_cast %163 : vector<8x32xf32> to vector<1x8x32xf32>
    %171 = vector.shape_cast %166 : vector<8x32xf32> to vector<1x8x32xf32>
    %172 = vector.shape_cast %169 : vector<8x32xf32> to vector<1x8x32xf32>
    "tpu.trace_start"() <{level = 10 : i32, message = "bqd,bkd->bqk"}> : () -> ()
    %cst_150 = arith.constant dense<0.000000e+00> : vector<1x8x8xf32>
    %173 = tpu.matmul %170, %171, %cst_150 {dimension_numbers = #tpu.dot_dimension_numbers<[2], [2], [1], [1], [0, 0, 0, 1, 1, 1], [0], [0]>} : vector<1x8x32xf32>, vector<1x8x32xf32>, vector<1x8x8xf32> -> vector<1x8x8xf32>
    "tpu.trace_stop"() : () -> ()
    %cst_151 = arith.constant dense<0xFF800000> : vector<1x8xf32>
    %174 = vector.multi_reduction <maximumf>, %173, %cst_151 [2] : vector<1x8x8xf32> to vector<1x8xf32>
    %175 = vector.shape_cast %174 : vector<1x8xf32> to vector<1x8x1xf32>
    %176 = vector.broadcast %175 : vector<1x8x1xf32> to vector<1x8x8xf32>
    %177 = arith.subf %173, %176 : vector<1x8x8xf32>
    %178 = math.exp %177 : vector<1x8x8xf32>
    %cst_152 = arith.constant dense<0.000000e+00> : vector<1x8xf32>
    %179 = vector.multi_reduction <add>, %178, %cst_152 [2] : vector<1x8x8xf32> to vector<1x8xf32>
    %180 = vector.shape_cast %179 : vector<1x8xf32> to vector<1x8x1xf32>
    %181 = tpu.reciprocal %180 {approx = true} : vector<1x8x1xf32> -> vector<1x8x1xf32>
    %182 = vector.broadcast %181 : vector<1x8x1xf32> to vector<1x8x8xf32>
    %183 = arith.mulf %178, %182 : vector<1x8x8xf32>
    "tpu.trace_start"() <{level = 10 : i32, message = "bqk,bkd->bqd"}> : () -> ()
    %cst_153 = arith.constant dense<0.000000e+00> : vector<1x8x32xf32>
    %184 = tpu.matmul %183, %172, %cst_153 {dimension_numbers = #tpu.dot_dimension_numbers<[2], [1], [1], [2], [0, 0, 0, 1, 1, 2], [0], [0]>} : vector<1x8x8xf32>, vector<1x8x32xf32>, vector<1x8x32xf32> -> vector<1x8x32xf32>
    "tpu.trace_stop"() : () -> ()
    %185 = vector.shape_cast %184 : vector<1x8x32xf32> to vector<8x32xf32>
    %cst_154 = arith.constant dense<0.000000e+00> : vector<8x32xf32>
    %186 = tpu.matmul %185, %29, %cst_154 {dimension_numbers = #tpu.dot_dimension_numbers<[1], [0], [0], [1], [0, 0, 1, 1], [], []>} : vector<8x32xf32>, vector<32x32xf32>, vector<8x32xf32> -> vector<8x32xf32>
    %187 = vector.broadcast %30 : vector<1x32xf32> to vector<8x32xf32>
    %188 = arith.addf %186, %187 : vector<8x32xf32>
    %189 = arith.addf %158, %188 : vector<8x32xf32>
    %cst_155 = arith.constant dense<0.000000e+00> : vector<8xf32>
    %190 = vector.multi_reduction <add>, %189, %cst_155 [1] : vector<8x32xf32> to vector<8xf32>
    %191 = vector.shape_cast %190 : vector<8xf32> to vector<8x1xf32>
    %cst_156 = arith.constant 3.200000e+01 : f32
    %192 = vector.broadcast %cst_156 : f32 to vector<8x1xf32>
    %193 = arith.divf %191, %192 : vector<8x1xf32>
    %194 = arith.mulf %189, %189 : vector<8x32xf32>
    %cst_157 = arith.constant dense<0.000000e+00> : vector<8xf32>
    %195 = vector.multi_reduction <add>, %194, %cst_157 [1] : vector<8x32xf32> to vector<8xf32>
    %196 = vector.shape_cast %195 : vector<8xf32> to vector<8x1xf32>
    %cst_158 = arith.constant 3.200000e+01 : f32
    %197 = vector.broadcast %cst_158 : f32 to vector<8x1xf32>
    %198 = arith.divf %196, %197 : vector<8x1xf32>
    %199 = arith.mulf %193, %193 : vector<8x1xf32>
    %200 = arith.subf %198, %199 : vector<8x1xf32>
    %201 = vector.broadcast %193 : vector<8x1xf32> to vector<8x32xf32>
    %202 = arith.subf %189, %201 : vector<8x32xf32>
    %cst_159 = arith.constant 9.99999974E-6 : f32
    %203 = vector.broadcast %cst_159 : f32 to vector<8x1xf32>
    %204 = arith.addf %200, %203 : vector<8x1xf32>
    %205 = math.rsqrt %204 : vector<8x1xf32>
    %206 = vector.broadcast %205 : vector<8x1xf32> to vector<8x32xf32>
    %207 = arith.mulf %202, %206 : vector<8x32xf32>
    %208 = vector.broadcast %31 : vector<1x32xf32> to vector<8x32xf32>
    %209 = arith.mulf %207, %208 : vector<8x32xf32>
    %210 = vector.broadcast %32 : vector<1x32xf32> to vector<8x32xf32>
    %211 = arith.addf %209, %210 : vector<8x32xf32>
    %cst_160 = arith.constant dense<0.000000e+00> : vector<8x32xf32>
    %212 = tpu.matmul %211, %33, %cst_160 {dimension_numbers = #tpu.dot_dimension_numbers<[1], [0], [0], [1], [0, 0, 1, 1], [], []>} : vector<8x32xf32>, vector<32x32xf32>, vector<8x32xf32> -> vector<8x32xf32>
    %213 = vector.broadcast %34 : vector<1x32xf32> to vector<8x32xf32>
    %214 = arith.addf %212, %213 : vector<8x32xf32>
    %cst_161 = arith.constant 0.000000e+00 : f32
    %215 = vector.broadcast %cst_161 : f32 to vector<8x32xf32>
    %216 = arith.maximumf %214, %215 : vector<8x32xf32>
    %cst_162 = arith.constant dense<0.000000e+00> : vector<8x32xf32>
    %217 = tpu.matmul %216, %35, %cst_162 {dimension_numbers = #tpu.dot_dimension_numbers<[1], [0], [0], [1], [0, 0, 1, 1], [], []>} : vector<8x32xf32>, vector<32x32xf32>, vector<8x32xf32> -> vector<8x32xf32>
    %218 = vector.broadcast %36 : vector<1x32xf32> to vector<8x32xf32>
    %219 = arith.addf %217, %218 : vector<8x32xf32>
    %220 = arith.addf %211, %219 : vector<8x32xf32>
    %cst_163 = arith.constant dense<0.000000e+00> : vector<8xf32>
    %221 = vector.multi_reduction <add>, %220, %cst_163 [1] : vector<8x32xf32> to vector<8xf32>
    %222 = vector.shape_cast %221 : vector<8xf32> to vector<8x1xf32>
    %cst_164 = arith.constant 3.200000e+01 : f32
    %223 = vector.broadcast %cst_164 : f32 to vector<8x1xf32>
    %224 = arith.divf %222, %223 : vector<8x1xf32>
    %225 = arith.mulf %220, %220 : vector<8x32xf32>
    %cst_165 = arith.constant dense<0.000000e+00> : vector<8xf32>
    %226 = vector.multi_reduction <add>, %225, %cst_165 [1] : vector<8x32xf32> to vector<8xf32>
    %227 = vector.shape_cast %226 : vector<8xf32> to vector<8x1xf32>
    %cst_166 = arith.constant 3.200000e+01 : f32
    %228 = vector.broadcast %cst_166 : f32 to vector<8x1xf32>
    %229 = arith.divf %227, %228 : vector<8x1xf32>
    %230 = arith.mulf %224, %224 : vector<8x1xf32>
    %231 = arith.subf %229, %230 : vector<8x1xf32>
    %232 = vector.broadcast %224 : vector<8x1xf32> to vector<8x32xf32>
    %233 = arith.subf %220, %232 : vector<8x32xf32>
    %cst_167 = arith.constant 9.99999974E-6 : f32
    %234 = vector.broadcast %cst_167 : f32 to vector<8x1xf32>
    %235 = arith.addf %231, %234 : vector<8x1xf32>
    %236 = math.rsqrt %235 : vector<8x1xf32>
    %237 = vector.broadcast %236 : vector<8x1xf32> to vector<8x32xf32>
    %238 = arith.mulf %233, %237 : vector<8x32xf32>
    %239 = vector.broadcast %37 : vector<1x32xf32> to vector<8x32xf32>
    %240 = arith.mulf %238, %239 : vector<8x32xf32>
    %241 = vector.broadcast %38 : vector<1x32xf32> to vector<8x32xf32>
    %242 = arith.addf %240, %241 : vector<8x32xf32>
    %243 = vector.shape_cast %242 : vector<8x32xf32> to vector<1x8x32xf32>
    %cst_168 = arith.constant dense<0.000000e+00> : vector<1x32xf32>
    %244 = vector.multi_reduction <add>, %243, %cst_168 [1] : vector<1x8x32xf32> to vector<1x32xf32>
    %cst_169 = arith.constant 8.000000e+00 : f32
    %245 = vector.broadcast %cst_169 : f32 to vector<1x32xf32>
    %246 = arith.divf %244, %245 : vector<1x32xf32>
    %247 = vector.shape_cast %246 : vector<1x32xf32> to vector<1x32xf32>
    %248 = vector.broadcast %247 : vector<1x32xf32> to vector<2x32xf32>
    %cst_170 = arith.constant dense<0.000000e+00> : vector<2x8xf32>
    %249 = tpu.matmul %2, %39, %cst_170 {dimension_numbers = #tpu.dot_dimension_numbers<[1], [0], [0], [1], [0, 0, 1, 1], [], []>} : vector<2x2xf32>, vector<2x8xf32>, vector<2x8xf32> -> vector<2x8xf32>
    %250 = vector.broadcast %40 : vector<1x8xf32> to vector<2x8xf32>
    %251 = arith.addf %249, %250 : vector<2x8xf32>
    %cst_171 = arith.constant 0.000000e+00 : f32
    %252 = vector.broadcast %cst_171 : f32 to vector<2x8xf32>
    %253 = arith.maximumf %251, %252 : vector<2x8xf32>
    %cst_172 = arith.constant dense<0.000000e+00> : vector<2x16xf32>
    %254 = tpu.matmul %253, %41, %cst_172 {dimension_numbers = #tpu.dot_dimension_numbers<[1], [0], [0], [1], [0, 0, 1, 1], [], []>} : vector<2x8xf32>, vector<8x16xf32>, vector<2x16xf32> -> vector<2x16xf32>
    %255 = vector.broadcast %42 : vector<1x16xf32> to vector<2x16xf32>
    %256 = arith.addf %254, %255 : vector<2x16xf32>
    %cst_173 = arith.constant 0.000000e+00 : f32
    %257 = vector.broadcast %cst_173 : f32 to vector<2x16xf32>
    %258 = arith.maximumf %256, %257 : vector<2x16xf32>
    %cst_174 = arith.constant dense<0.000000e+00> : vector<2x32xf32>
    %259 = tpu.matmul %258, %43, %cst_174 {dimension_numbers = #tpu.dot_dimension_numbers<[1], [0], [0], [1], [0, 0, 1, 1], [], []>} : vector<2x16xf32>, vector<16x32xf32>, vector<2x32xf32> -> vector<2x32xf32>
    %260 = vector.broadcast %44 : vector<1x32xf32> to vector<2x32xf32>
    %261 = arith.addf %259, %260 : vector<2x32xf32>
    %cst_175 = arith.constant dense<0.000000e+00> : vector<2xf32>
    %262 = vector.multi_reduction <add>, %261, %cst_175 [1] : vector<2x32xf32> to vector<2xf32>
    %263 = vector.shape_cast %262 : vector<2xf32> to vector<2x1xf32>
    %cst_176 = arith.constant 3.200000e+01 : f32
    %264 = vector.broadcast %cst_176 : f32 to vector<2x1xf32>
    %265 = arith.divf %263, %264 : vector<2x1xf32>
    %266 = arith.mulf %261, %261 : vector<2x32xf32>
    %cst_177 = arith.constant dense<0.000000e+00> : vector<2xf32>
    %267 = vector.multi_reduction <add>, %266, %cst_177 [1] : vector<2x32xf32> to vector<2xf32>
    %268 = vector.shape_cast %267 : vector<2xf32> to vector<2x1xf32>
    %cst_178 = arith.constant 3.200000e+01 : f32
    %269 = vector.broadcast %cst_178 : f32 to vector<2x1xf32>
    %270 = arith.divf %268, %269 : vector<2x1xf32>
    %271 = arith.mulf %265, %265 : vector<2x1xf32>
    %272 = arith.subf %270, %271 : vector<2x1xf32>
    %273 = vector.broadcast %265 : vector<2x1xf32> to vector<2x32xf32>
    %274 = arith.subf %261, %273 : vector<2x32xf32>
    %cst_179 = arith.constant 9.99999974E-6 : f32
    %275 = vector.broadcast %cst_179 : f32 to vector<2x1xf32>
    %276 = arith.addf %272, %275 : vector<2x1xf32>
    %277 = math.rsqrt %276 : vector<2x1xf32>
    %278 = vector.broadcast %277 : vector<2x1xf32> to vector<2x32xf32>
    %279 = arith.mulf %274, %278 : vector<2x32xf32>
    %280 = vector.broadcast %45 : vector<1x32xf32> to vector<2x32xf32>
    %281 = arith.mulf %279, %280 : vector<2x32xf32>
    %282 = vector.broadcast %46 : vector<1x32xf32> to vector<2x32xf32>
    %283 = arith.addf %281, %282 : vector<2x32xf32>
    %c0_180 = arith.constant 0 : index
    %c0_181 = arith.constant 0 : index
    %284 = vector.load %arg62[%c0_180, %c0_181] : memref<2x96xf32, #tpu.memory_space<vmem>>, vector<2x32xf32>
    tpu.vector_store %arg62[%c0_180, %c0_181], %154 {strides = array<i32>} : memref<2x96xf32, #tpu.memory_space<vmem>>, vector<2x32xf32>,
    %c0_182 = arith.constant 0 : index
    %c32 = arith.constant 32 : index
    %285 = vector.load %arg62[%c0_182, %c32] : memref<2x96xf32, #tpu.memory_space<vmem>>, vector<2x32xf32>
    tpu.vector_store %arg62[%c0_182, %c32], %248 {strides = array<i32>} : memref<2x96xf32, #tpu.memory_space<vmem>>, vector<2x32xf32>,
    %c0_183 = arith.constant 0 : index
    %c64 = arith.constant 64 : index
    %286 = vector.load %arg62[%c0_183, %c64] : memref<2x96xf32, #tpu.memory_space<vmem>>, vector<2x32xf32>
    tpu.vector_store %arg62[%c0_183, %c64], %283 {strides = array<i32>} : memref<2x96xf32, #tpu.memory_space<vmem>>, vector<2x32xf32>,
    %c0_184 = arith.constant 0 : index
    %c0_185 = arith.constant 0 : index
    %287 = vector.load %arg62[%c0_184, %c0_185] : memref<2x96xf32, #tpu.memory_space<vmem>>, vector<2x96xf32>
    %cst_186 = arith.constant dense<0.000000e+00> : vector<2x96xf32>
    %288 = tpu.matmul %287, %47, %cst_186 {dimension_numbers = #tpu.dot_dimension_numbers<[1], [0], [0], [1], [0, 0, 1, 1], [], []>} : vector<2x96xf32>, vector<96x96xf32>, vector<2x96xf32> -> vector<2x96xf32>
    %289 = vector.broadcast %48 : vector<1x96xf32> to vector<2x96xf32>
    %290 = arith.addf %288, %289 : vector<2x96xf32>
    %cst_187 = arith.constant dense<0.000000e+00> : vector<2x96xf32>
    %291 = tpu.matmul %290, %49, %cst_187 {dimension_numbers = #tpu.dot_dimension_numbers<[1], [0], [0], [1], [0, 0, 1, 1], [], []>} : vector<2x96xf32>, vector<96x96xf32>, vector<2x96xf32> -> vector<2x96xf32>
    %292 = vector.broadcast %50 : vector<1x96xf32> to vector<2x96xf32>
    %293 = arith.addf %291, %292 : vector<2x96xf32>
    %294 = arith.addf %287, %293 : vector<2x96xf32>
    %cst_188 = arith.constant dense<0.000000e+00> : vector<2xf32>
    %295 = vector.multi_reduction <add>, %294, %cst_188 [1] : vector<2x96xf32> to vector<2xf32>
    %296 = vector.shape_cast %295 : vector<2xf32> to vector<2x1xf32>
    %cst_189 = arith.constant 9.600000e+01 : f32
    %297 = vector.broadcast %cst_189 : f32 to vector<2x1xf32>
    %298 = arith.divf %296, %297 : vector<2x1xf32>
    %299 = arith.mulf %294, %294 : vector<2x96xf32>
    %cst_190 = arith.constant dense<0.000000e+00> : vector<2xf32>
    %300 = vector.multi_reduction <add>, %299, %cst_190 [1] : vector<2x96xf32> to vector<2xf32>
    %301 = vector.shape_cast %300 : vector<2xf32> to vector<2x1xf32>
    %cst_191 = arith.constant 9.600000e+01 : f32
    %302 = vector.broadcast %cst_191 : f32 to vector<2x1xf32>
    %303 = arith.divf %301, %302 : vector<2x1xf32>
    %304 = arith.mulf %298, %298 : vector<2x1xf32>
    %305 = arith.subf %303, %304 : vector<2x1xf32>
    %306 = vector.broadcast %298 : vector<2x1xf32> to vector<2x96xf32>
    %307 = arith.subf %294, %306 : vector<2x96xf32>
    %cst_192 = arith.constant 9.99999974E-6 : f32
    %308 = vector.broadcast %cst_192 : f32 to vector<2x1xf32>
    %309 = arith.addf %305, %308 : vector<2x1xf32>
    %310 = math.rsqrt %309 : vector<2x1xf32>
    %311 = vector.broadcast %310 : vector<2x1xf32> to vector<2x96xf32>
    %312 = arith.mulf %307, %311 : vector<2x96xf32>
    %313 = vector.broadcast %51 : vector<1x96xf32> to vector<2x96xf32>
    %314 = arith.mulf %312, %313 : vector<2x96xf32>
    %315 = vector.broadcast %52 : vector<1x96xf32> to vector<2x96xf32>
    %316 = arith.addf %314, %315 : vector<2x96xf32>
    %cst_193 = arith.constant dense<0.000000e+00> : vector<2x96xf32>
    %317 = tpu.matmul %316, %53, %cst_193 {dimension_numbers = #tpu.dot_dimension_numbers<[1], [0], [0], [1], [0, 0, 1, 1], [], []>} : vector<2x96xf32>, vector<96x96xf32>, vector<2x96xf32> -> vector<2x96xf32>
    %318 = vector.broadcast %54 : vector<1x96xf32> to vector<2x96xf32>
    %319 = arith.addf %317, %318 : vector<2x96xf32>
    %cst_194 = arith.constant 0.000000e+00 : f32
    %320 = vector.broadcast %cst_194 : f32 to vector<2x96xf32>
    %321 = arith.maximumf %319, %320 : vector<2x96xf32>
    %cst_195 = arith.constant dense<0.000000e+00> : vector<2x96xf32>
    %322 = tpu.matmul %321, %55, %cst_195 {dimension_numbers = #tpu.dot_dimension_numbers<[1], [0], [0], [1], [0, 0, 1, 1], [], []>} : vector<2x96xf32>, vector<96x96xf32>, vector<2x96xf32> -> vector<2x96xf32>
    %323 = vector.broadcast %56 : vector<1x96xf32> to vector<2x96xf32>
    %324 = arith.addf %322, %323 : vector<2x96xf32>
    %325 = arith.addf %316, %324 : vector<2x96xf32>
    %cst_196 = arith.constant dense<0.000000e+00> : vector<2xf32>
    %326 = vector.multi_reduction <add>, %325, %cst_196 [1] : vector<2x96xf32> to vector<2xf32>
    %327 = vector.shape_cast %326 : vector<2xf32> to vector<2x1xf32>
    %cst_197 = arith.constant 9.600000e+01 : f32
    %328 = vector.broadcast %cst_197 : f32 to vector<2x1xf32>
    %329 = arith.divf %327, %328 : vector<2x1xf32>
    %330 = arith.mulf %325, %325 : vector<2x96xf32>
    %cst_198 = arith.constant dense<0.000000e+00> : vector<2xf32>
    %331 = vector.multi_reduction <add>, %330, %cst_198 [1] : vector<2x96xf32> to vector<2xf32>
    %332 = vector.shape_cast %331 : vector<2xf32> to vector<2x1xf32>
    %cst_199 = arith.constant 9.600000e+01 : f32
    %333 = vector.broadcast %cst_199 : f32 to vector<2x1xf32>
    %334 = arith.divf %332, %333 : vector<2x1xf32>
    %335 = arith.mulf %329, %329 : vector<2x1xf32>
    %336 = arith.subf %334, %335 : vector<2x1xf32>
    %337 = vector.broadcast %329 : vector<2x1xf32> to vector<2x96xf32>
    %338 = arith.subf %325, %337 : vector<2x96xf32>
    %cst_200 = arith.constant 9.99999974E-6 : f32
    %339 = vector.broadcast %cst_200 : f32 to vector<2x1xf32>
    %340 = arith.addf %336, %339 : vector<2x1xf32>
    %341 = math.rsqrt %340 : vector<2x1xf32>
    %342 = vector.broadcast %341 : vector<2x1xf32> to vector<2x96xf32>
    %343 = arith.mulf %338, %342 : vector<2x96xf32>
    %344 = vector.broadcast %57 : vector<1x96xf32> to vector<2x96xf32>
    %345 = arith.mulf %343, %344 : vector<2x96xf32>
    %346 = vector.broadcast %58 : vector<1x96xf32> to vector<2x96xf32>
    %347 = arith.addf %345, %346 : vector<2x96xf32>
    %cst_201 = arith.constant dense<0.000000e+00> : vector<2x1xf32>
    %348 = tpu.matmul %347, %59, %cst_201 {dimension_numbers = #tpu.dot_dimension_numbers<[1], [0], [0], [1], [0, 0, 1, 1], [], []>} : vector<2x96xf32>, vector<96x1xf32>, vector<2x1xf32> -> vector<2x1xf32>
    %349 = vector.broadcast %60 : vector<1x1xf32> to vector<2x1xf32>
    %350 = arith.addf %348, %349 : vector<2x1xf32>
    %c0_202 = arith.constant 0 : index
    %c0_203 = arith.constant 0 : index
    %351 = vector.load %arg61[%c0_202, %c0_203] : memref<2x1xf32, #tpu.memory_space<vmem>>, vector<2x1xf32>
    tpu.vector_store %arg61[%c0_202, %c0_203], %350 {strides = array<i32>} : memref<2x1xf32, #tpu.memory_space<vmem>>, vector<2x1xf32>,
    return
  }
}

</mosaic_0001>

<bundles_post_ra>
// kernel: forward.1
= control target key start
LH: loop header
LB: loop body
LE: loop exit
PB: predicated region body
PF: predicated region fallthrough
CT: control target
= control target key end

     0   :  { %s4518_s6 = smov 1   ;;  %s4519_s10 = smov 2   ;;  %s5369_s0 = inlined_call_operand.smem [shape: u32[62], index: -1, kind: input, shape index: {}] }
   0x1   :  { %s4608_s5 = sld [smem:[%s5369_s0]]   ;;  %s4520_s14 = smov 3  }
   0x2   :  { %s4613_s9 = sld [smem:[%s5369_s0 + %s4518_s6]]   ;;  %s4521_s18 = smov 4  }
   0x3   :  { %s4618_s13 = sld [smem:[%s5369_s0 + %s4519_s10]]   ;;  %s4522_s22 = smov 5  }
   0x4   :  { %s4623_s17 = sld [smem:[%s5369_s0 + %s4520_s14]]   ;;  %s4523_s26 = smov 6  }
   0x5   :  { %s4628_s21 = sld [smem:[%s5369_s0 + %s4521_s18]]   ;;  %s4524_s30 = smov 7  }
   0x6   :  { %s4633_s25 = sld [smem:[%s5369_s0 + %s4522_s22]]   ;;  %s4525_s4 = smov 8  }
   0x7   :  { %5391 = sst [smem:[#allocation38_spill]] %s4608_s5  ;;  %s4526_s10 = smov 9  }
   0x8   :  { %5392 = sst [smem:[#allocation39_spill]] %s4613_s9  ;;  %s4527_s15 = smov 10  }
   0x9   :  { %5393 = sst [smem:[#allocation40_spill]] %s4618_s13  ;;  %s4528_s20 = smov 11  }
   0xa   :  { %5394 = sst [smem:[#allocation41_spill]] %s4623_s17  ;;  %s4530_s1 = smov 13  }
   0xb   :  { %5395 = sst [smem:[#allocation42_spill]] %s4628_s21  ;;  %s4531_s7 = smov 14  }
   0xc   :  { %5396 = sst [smem:[#allocation43_spill]] %s4633_s25  ;;  %s4533_s22 = smov 16  }
   0xd   :  { %s4638_s29 = sld [smem:[%s5369_s0 + %s4523_s26]]   ;;  %s4529_s26 = smov 12  }
   0xe   :  { %s4643_s3 = sld [smem:[%s5369_s0 + %s4524_s30]]   ;;  %s4534_s28 = smov 17  }
   0xf   :  { %s4648_s8 = sld [smem:[%s5369_s0 + %s4525_s4]]  }
  0x10   :  { %s4653_s14 = sld [smem:[%s5369_s0 + %s4526_s10]]  }
  0x11   :  { %s4658_s19 = sld [smem:[%s5369_s0 + %s4527_s15]]   ;;  %s4532_s15 = smov 15  }
  0x12   :  { %s4663_s24 = sld [smem:[%s5369_s0 + %s4528_s20]]  }
  0x13   :  { %5397 = sst [smem:[#allocation44_spill]] %s4638_s29 }
  0x14   :  { %5398 = sst [smem:[#allocation45_spill]] %s4643_s3 }
  0x15   :  { %5399 = sst [smem:[#allocation46_spill]] %s4648_s8 }
  0x16   :  { %5400 = sst [smem:[#allocation47_spill]] %s4653_s14 }
  0x17   :  { %5401 = sst [smem:[#allocation48_spill]] %s4658_s19 }
  0x18   :  { %5402 = sst [smem:[#allocation49_spill]] %s4663_s24 }
  0x19   :  { %s4668_s30 = sld [smem:[%s5369_s0 + %s4529_s26]]  }
  0x1a   :  { %s4673_s6 = sld [smem:[%s5369_s0 + %s4530_s1]]   ;;  %s4578_s1 = smov 61  }
  0x1b   :  { %s4678_s12 = sld [smem:[%s5369_s0 + %s4531_s7]]   ;;  %s4535_s7 = smov 18  }
  0x1c   :  { %s4683_s20 = sld [smem:[%s5369_s0 + %s4532_s15]]   ;;  %s4536_s15 = smov 19  }
  0x1d   :  { %s4688_s27 = sld [smem:[%s5369_s0 + %s4533_s22]]   ;;  %s4537_s22 = smov 20  }
  0x1e   :  { %s4693_s4 = sld [smem:[%s5369_s0 + %s4534_s28]]   ;;  %s4538_s28 = smov 21  }
  0x1f   :  { %5403 = sst [smem:[#allocation50_spill]] %s4668_s30 }
  0x20   :  { %5404 = sst [smem:[#allocation51_spill]] %s4673_s6 }
  0x21   :  { %5405 = sst [smem:[#allocation52_spill]] %s4678_s12 }
  0x22   :  { %5406 = sst [smem:[#allocation53_spill]] %s4683_s20 }
  0x23   :  { %5407 = sst [smem:[#allocation54_spill]] %s4688_s27 }
  0x24   :  { %5408 = sst [smem:[#allocation55_spill]] %s4693_s4 }
  0x25   :  { %s4698_s13 = sld [smem:[%s5369_s0 + %s4535_s7]]   ;;  %s4539_s7 = smov 22  }
  0x26   :  { %s4703_s29 = sld [smem:[%s5369_s0 + %s4536_s15]]   ;;  %s4540_s15 = smov 23  }
  0x27   :  { %s4708_s9 = sld [smem:[%s5369_s0 + %s4537_s22]]   ;;  %s4541_s22 = smov 24  }
  0x28   :  { %s4713_s25 = sld [smem:[%s5369_s0 + %s4538_s28]]   ;;  %s4542_s28 = smov 25  }
  0x29   :  { %s4723_s27 = sld [smem:[%s5369_s0 + %s4540_s15]]   ;;  %s4544_s15 = smov 27  }
  0x2b   :  { %5409 = sst [smem:[#allocation56_spill]] %s4698_s13 }
  0x2c   :  { %5410 = sst [smem:[#allocation57_spill]] %s4703_s29 }
  0x2d   :  { %5411 = sst [smem:[#allocation58_spill]] %s4708_s9 }
  0x2e   :  { %5412 = sst [smem:[#allocation59_spill]] %s4713_s25 }
  0x2f   :  { %s4718_s13 = sld [smem:[%s5369_s0 + %s4539_s7]]   ;;  %s4543_s7 = smov 26  }
  0x30   :  { %5414 = sst [smem:[#allocation61_spill]] %s4723_s27 }
  0x31   :  { %s4728_s9 = sld [smem:[%s5369_s0 + %s4541_s22]]   ;;  %s4545_s22 = smov 28  }
  0x32   :  { %s4733_s25 = sld [smem:[%s5369_s0 + %s4542_s28]]   ;;  %s4546_s28 = smov 29  }
  0x33   :  { %s4743_s27 = sld [smem:[%s5369_s0 + %s4544_s15]]   ;;  %s4548_s15 = smov 31  }
  0x35   :  { %5413 = sst [smem:[#allocation60_spill]] %s4718_s13 }
  0x36   :  { %s4738_s13 = sld [smem:[%s5369_s0 + %s4543_s7]]   ;;  %s4547_s7 = smov 30  }
  0x37   :  { %5415 = sst [smem:[#allocation62_spill]] %s4728_s9 }
  0x38   :  { %5416 = sst [smem:[#allocation63_spill]] %s4733_s25 }
  0x39   :  { %5418 = sst [smem:[#allocation65_spill]] %s4743_s27 }
  0x3a   :  { %s4748_s9 = sld [smem:[%s5369_s0 + %s4545_s22]]   ;;  %s4549_s22 = smov 32  }
  0x3b   :  { %s4753_s25 = sld [smem:[%s5369_s0 + %s4546_s28]]   ;;  %s4550_s28 = smov 33  }
  0x3c   :  { %5417 = sst [smem:[#allocation64_spill]] %s4738_s13 }
  0x3d   :  { %s4758_s13 = sld [smem:[%s5369_s0 + %s4547_s7]]   ;;  %s4551_s7 = smov 34  }
  0x3e   :  { %s4763_s27 = sld [smem:[%s5369_s0 + %s4548_s15]]   ;;  %s4552_s15 = smov 35  }
  0x40   :  { %5419 = sst [smem:[#allocation66_spill]] %s4748_s9 }
  0x41   :  { %5420 = sst [smem:[#allocation67_spill]] %s4753_s25 }
  0x42   :  { %s4768_s9 = sld [smem:[%s5369_s0 + %s4549_s22]]   ;;  %s4553_s22 = smov 36  }
  0x43   :  { %5421 = sst [smem:[#allocation68_spill]] %s4758_s13 }
  0x44   :  { %5422 = sst [smem:[#allocation69_spill]] %s4763_s27 }
  0x45   :  { %s4773_s25 = sld [smem:[%s5369_s0 + %s4550_s28]]   ;;  %s4554_s28 = smov 37  }
  0x46   :  { %s4778_s13 = sld [smem:[%s5369_s0 + %s4551_s7]]   ;;  %s4555_s7 = smov 38  }
  0x47   :  { %s4783_s27 = sld [smem:[%s5369_s0 + %s4552_s15]]   ;;  %s4556_s15 = smov 39  }
  0x48   :  { %5423 = sst [smem:[#allocation70_spill]] %s4768_s9 }
  0x49   :  { %s4788_s9 = sld [smem:[%s5369_s0 + %s4553_s22]]   ;;  %s4557_s22 = smov 40  }
  0x4a   :  { %s4808_s20 = sld [smem:[%s5369_s0 + %s4557_s22]]   ;;  %s4561_s22 = smov 44  }
  0x4b   :  { %5424 = sst [smem:[#allocation71_spill]] %s4773_s25 }
  0x4c   :  { %5425 = sst [smem:[#allocation72_spill]] %s4778_s13 }
  0x4d   :  { %5426 = sst [smem:[#allocation73_spill]] %s4783_s27 }
  0x4e   :  { %s4793_s25 = sld [smem:[%s5369_s0 + %s4554_s28]]   ;;  %s4558_s28 = smov 41  }
  0x4f   :  { %s4798_s13 = sld [smem:[%s5369_s0 + %s4555_s7]]   ;;  %s4559_s7 = smov 42  }
  0x50   :  { %s4803_s27 = sld [smem:[%s5369_s0 + %s4556_s15]]   ;;  %s4560_s15 = smov 43  }
  0x51   :  { %s4813_s29 = sld [smem:[%s5369_s0 + %s4558_s28]]   ;;  %s4562_s28 = smov 45  }
  0x52   :  { %s4818_s4 = sld [smem:[%s5369_s0 + %s4559_s7]]   ;;  %s4563_s7 = smov 46  }
  0x53   :  { %s4828_s12 = sld [smem:[%s5369_s0 + %s4561_s22]]   ;;  %s4565_s22 = smov 48  }
  0x54   :  { %s4838_s6 = sld [smem:[%s5369_s0 + %s4563_s7]]   ;;  %s4567_s7 = smov 50  }
  0x55   :  { %s4848_s30 = sld [smem:[%s5369_s0 + %s4565_s22]]   ;;  %s4569_s22 = smov 52  }
  0x56   :  { %5427 = sst [smem:[#allocation74_spill]] %s4803_s27 }
  0x57   :  { %5428 = sst [smem:[#allocation75_spill]] %s4813_s29 }
  0x58   :  { %s4823_s27 = sld [smem:[%s5369_s0 + %s4560_s15]]   ;;  %s4564_s15 = smov 47  }
  0x59   :  { %s4833_s29 = sld [smem:[%s5369_s0 + %s4562_s28]]   ;;  %s4566_s28 = smov 49  }
  0x5a   :  { %s4853_s19 = sld [smem:[%s5369_s0 + %s4566_s28]]   ;;  %s4570_s28 = smov 53  }
  0x5b   :  { %s4858_s8 = sld [smem:[%s5369_s0 + %s4567_s7]]   ;;  %s4571_s7 = smov 54  }
  0x5c   :  { %s4868_s24 = sld [smem:[%s5369_s0 + %s4569_s22]]   ;;  %s4573_s22 = smov 56  }
  0x5d   :  { %s4878_s21 = sld [smem:[%s5369_s0 + %s4571_s7]]   ;;  %s4575_s7 = smov 58  }
  0x5e   :  { %5429 = sst [smem:[#allocation76_spill]] %s4823_s27 }
  0x5f   :  { %s4843_s27 = sld [smem:[%s5369_s0 + %s4564_s15]]   ;;  %s4568_s15 = smov 51  }
  0x60   :  { %5431 = sst [smem:[#allocation78_spill]] %s4853_s19 }
  0x61   :  { %s4873_s19 = sld [smem:[%s5369_s0 + %s4570_s28]]   ;;  %s4574_s28 = smov 57  }
  0x62   :  { %s4888_s3 = sld [smem:[%s5369_s0 + %s4573_s22]]   ;;  %s4577_s22 = smov 60  }
  0x63   :  { %s4898_s5 = sld [smem:[%s5369_s0 + %s4575_s7]]  }
  0x64   :  { %s3250_s17 = sld [smem:[%s5369_s0 + %s4577_s22]]  }
  0x65   :  { %5430 = sst [smem:[#allocation77_spill]] %s4843_s27 }
  0x66   :  { %s4863_s27 = sld [smem:[%s5369_s0 + %s4568_s15]]   ;;  %s4572_s15 = smov 55  }
  0x67   :  { %5432 = sst [smem:[#allocation79_spill]] %s4873_s19 }
  0x68   :  { %s4883_s14 = sld [smem:[%s5369_s0 + %s4572_s15]]   ;;  %s4576_s15 = smov 59  }
  0x69   :  { %s4893_s19 = sld [smem:[%s5369_s0 + %s4574_s28]]  }
  0x6a   :  { %v128_v0 = vstv %s3250_s17 }
  0x6b   :  { %129 = vst [vmem:[#allocation3] sm:$0x1] %v128_v0 }
  0x6e   :  { %5433 = sst [smem:[#allocation80_spill]] %s4883_s14 }
  0x6f   :  { %5434 = sst [smem:[#allocation81_spill]] %s4893_s19 }
  0x70   :  { %s4903_s14 = sld [smem:[%s5369_s0 + %s4576_s15]]  }
  0x71   :  { %s4911_s19 = sld [smem:[%s5369_s0 + %s4578_s1]]  }
  0x72   :  { %130 = vsyncpa [#allocation5], 0 }
  0x73   :  { %131 = vsyncpa [#allocation7], 0 }
  0x74   :  { %132 = vsyncpa [#allocation10], 0 }
  0x75   :  { %133 = vsyncpa [#allocation13], 0 }
  0x76   :  { %134 = vsyncpa [#allocation16], 0 }
  0x77   :  { %135 = vsyncpa [#allocation19], 0 }
  0x78   :  { %136 = vsyncpa [#allocation22], 0 }
  0x79   :  { %137 = vsyncpa [#allocation25], 0 }
  0x7a   :  { %138 = vsyncpa [#allocation28], 0  ;;  %s4579_s7 = smov [#allocation6]   ;;  %s4580_s11 = smov [#allocation9]  }
  0x7b   :  { %s227_s10 = sshll.u32 %s4579_s7, 4  ;;  %s249_s15 = sshll.u32 %s4580_s11, 4  ;;  %s228_s10 = int_to_ptr.vmem [resolvable:$true] %s227_s10  ;;  %s250_s15 = int_to_ptr.vmem [resolvable:$true] %s249_s15 }
  0x7c   :  { %s4148_s0 = scalar_lea.hbm %s4793_s25, 16 }
  0x7d   :  { %p4149_p0 = scmp.ne.s32.totalorder %s4793_s25, %s4148_s0  ;;  %p4152_p1 = scmp.lt.u32.totalorder %s4148_s0, %s4793_s25 }
  0x7f   :  { %p4154_p2 = pnand %p4152_p1, %p4149_p0 }
  0x81   :  { %4157 = shalt.err (!%p4154_p2)
}
  0x82   :  { %s4158_s17 = scalar_lea.vmem %s228_s10, 16  ;;  %s4162_s16 = scalar_lea.vmem %s228_s10, 32 }
  0x83   :  { %p4159_p3 = scmp.ne.s32.totalorder %s228_s10, %s4158_s17  ;;  %p4163_p4 = scmp.lt.s32.totalorder %s228_s10, %s228_s10 }
  0x84   :  { %p4164_p5 = scmp.lt.s32.totalorder %s4162_s16, %s4158_s17 }
  0x86   :  { %p4165_p6 = por %p4164_p5, %p4163_p4 }
  0x88   :  { %p4166_p7 = pnand %p4165_p6, %p4159_p3 }
  0x8a   :  { %4169 = shalt.err (!%p4166_p7)
}
  0x8b   :  { %230 = dma.hbm_to_vmem [thread:$0]  %s4793_s25, 16, %s228_s10, [#allocation7]  }
  0x8c   :  { %s4170_s18 = scalar_lea.hbm %s4808_s20, 16 }
  0x8d   :  { %p4171_p8 = scmp.ne.s32.totalorder %s4808_s20, %s4170_s18  ;;  %p4174_p9 = scmp.lt.u32.totalorder %s4170_s18, %s4808_s20 }
  0x8f   :  { %p4176_p10 = pnand %p4174_p9, %p4171_p8 }
  0x91   :  { %4179 = shalt.err (!%p4176_p10)
}
  0x92   :  { %s4180_s22 = scalar_lea.vmem %s250_s15, 16  ;;  %s4184_s23 = scalar_lea.vmem %s250_s15, 32 }
  0x93   :  { %p4181_p11 = scmp.ne.s32.totalorder %s250_s15, %s4180_s22  ;;  %p4185_p12 = scmp.lt.s32.totalorder %s250_s15, %s250_s15 }
  0x94   :  { %p4186_p13 = scmp.lt.s32.totalorder %s4184_s23, %s4180_s22 }
  0x96   :  { %p4187_p0 = por %p4186_p13, %p4185_p12 }
  0x98   :  { %p4188_p1 = pnand %p4187_p0, %p4181_p11 }
  0x9a   :  { %4191 = shalt.err (!%p4188_p1)
}
  0x9b   :  { %252 = dma.hbm_to_vmem [thread:$0]  %s4808_s20, 16, %s250_s15, [#allocation10]  }
  0x9c   :  { %s4581_s26 = smov [#allocation12]   ;;  %s4582_s1 = smov [#allocation15]  }
  0x9d   :  { %s273_s25 = sshll.u32 %s4581_s26, 4  ;;  %s293_s28 = sshll.u32 %s4582_s1, 4  ;;  %s274_s25 = int_to_ptr.vmem [resolvable:$true] %s273_s25  ;;  %s294_s28 = int_to_ptr.vmem [resolvable:$true] %s293_s28 }
  0x9e   :  { %s4192_s2 = scalar_lea.hbm %s4828_s12, 16 }
  0x9f   :  { %p4193_p2 = scmp.ne.s32.totalorder %s4828_s12, %s4192_s2  ;;  %p4196_p3 = scmp.lt.u32.totalorder %s4192_s2, %s4828_s12 }
  0xa1   :  { %p4198_p4 = pnand %p4196_p3, %p4193_p2 }
  0xa3   :  { %4201 = shalt.err (!%p4198_p4)
}
  0xa4   :  { %s4202_s7 = scalar_lea.vmem %s274_s25, 16  ;;  %s4206_s10 = scalar_lea.vmem %s274_s25, 32 }
  0xa5   :  { %p4203_p5 = scmp.ne.s32.totalorder %s274_s25, %s4202_s7  ;;  %p4207_p6 = scmp.lt.s32.totalorder %s274_s25, %s274_s25 }
  0xa6   :  { %p4208_p7 = scmp.lt.s32.totalorder %s4206_s10, %s4202_s7 }
  0xa8   :  { %p4209_p8 = por %p4208_p7, %p4207_p6 }
  0xaa   :  { %p4210_p9 = pnand %p4209_p8, %p4203_p5 }
  0xac   :  { %4213 = shalt.err (!%p4210_p9)
}
  0xad   :  { %276 = dma.hbm_to_vmem [thread:$0]  %s4828_s12, 16, %s274_s25, [#allocation13]  }
  0xae   :  { %s4214_s20 = scalar_lea.hbm %s4838_s6, 16 }
  0xaf   :  { %p4215_p10 = scmp.ne.s32.totalorder %s4838_s6, %s4214_s20  ;;  %p4218_p11 = scmp.lt.u32.totalorder %s4214_s20, %s4838_s6 }
  0xb1   :  { %p4220_p12 = pnand %p4218_p11, %p4215_p10 }
  0xb3   :  { %4223 = shalt.err (!%p4220_p12)
}
  0xb4   :  { %s4224_s11 = scalar_lea.vmem %s294_s28, 16  ;;  %s4228_s15 = scalar_lea.vmem %s294_s28, 32 }
  0xb5   :  { %p4225_p13 = scmp.ne.s32.totalorder %s294_s28, %s4224_s11  ;;  %p4229_p0 = scmp.lt.s32.totalorder %s294_s28, %s294_s28 }
  0xb6   :  { %p4230_p1 = scmp.lt.s32.totalorder %s4228_s15, %s4224_s11 }
  0xb8   :  { %p4231_p2 = por %p4230_p1, %p4229_p0 }
  0xba   :  { %p4232_p3 = pnand %p4231_p2, %p4225_p13 }
  0xbc   :  { %4235 = shalt.err (!%p4232_p3)
}
  0xbd   :  { %296 = dma.hbm_to_vmem [thread:$0]  %s4838_s6, 16, %s294_s28, [#allocation16]  }
  0xbe   :  { %s4583_s0 = smov [#allocation18]   ;;  %s4584_s17 = smov [#allocation21]  }
  0xbf   :  { %s317_s12 = sshll.u32 %s4583_s0, 4  ;;  %s337_s16 = sshll.u32 %s4584_s17, 4  ;;  %s318_s12 = int_to_ptr.vmem [resolvable:$true] %s317_s12  ;;  %s338_s16 = int_to_ptr.vmem [resolvable:$true] %s337_s16 }
  0xc0   :  { %s4236_s18 = scalar_lea.hbm %s4858_s8, 16 }
  0xc1   :  { %p4237_p4 = scmp.ne.s32.totalorder %s4858_s8, %s4236_s18  ;;  %p4240_p5 = scmp.lt.u32.totalorder %s4236_s18, %s4858_s8 }
  0xc3   :  { %p4242_p6 = pnand %p4240_p5, %p4237_p4 }
  0xc5   :  { %4245 = shalt.err (!%p4242_p6)
}
  0xc6   :  { %s4246_s22 = scalar_lea.vmem %s318_s12, 16  ;;  %s4250_s23 = scalar_lea.vmem %s318_s12, 32 }
  0xc7   :  { %p4247_p7 = scmp.ne.s32.totalorder %s318_s12, %s4246_s22  ;;  %p4251_p8 = scmp.lt.s32.totalorder %s318_s12, %s318_s12 }
  0xc8   :  { %p4252_p9 = scmp.lt.s32.totalorder %s4250_s23, %s4246_s22 }
  0xca   :  { %p4253_p10 = por %p4252_p9, %p4251_p8 }
  0xcc   :  { %p4254_p11 = pnand %p4253_p10, %p4247_p7 }
  0xce   :  { %4257 = shalt.err (!%p4254_p11)
}
  0xcf   :  { %320 = dma.hbm_to_vmem [thread:$0]  %s4858_s8, 16, %s318_s12, [#allocation19]  }
  0xd0   :  { %s4258_s6 = scalar_lea.hbm %s4868_s24, 16 }
  0xd1   :  { %p4259_p12 = scmp.ne.s32.totalorder %s4868_s24, %s4258_s6  ;;  %p4262_p13 = scmp.lt.u32.totalorder %s4258_s6, %s4868_s24 }
  0xd3   :  { %p4264_p0 = pnand %p4262_p13, %p4259_p12 }
  0xd5   :  { %4267 = shalt.err (!%p4264_p0)
}
  0xd6   :  { %s4268_s26 = scalar_lea.vmem %s338_s16, 16  ;;  %s4272_s25 = scalar_lea.vmem %s338_s16, 32 }
  0xd7   :  { %p4269_p1 = scmp.ne.s32.totalorder %s338_s16, %s4268_s26  ;;  %p4273_p2 = scmp.lt.s32.totalorder %s338_s16, %s338_s16 }
  0xd8   :  { %p4274_p3 = scmp.lt.s32.totalorder %s4272_s25, %s4268_s26 }
  0xda   :  { %p4275_p4 = por %p4274_p3, %p4273_p2 }
  0xdc   :  { %p4276_p5 = pnand %p4275_p4, %p4269_p1 }
  0xde   :  { %4279 = shalt.err (!%p4276_p5)
}
  0xdf   :  { %340 = dma.hbm_to_vmem [thread:$0]  %s4868_s24, 16, %s338_s16, [#allocation22]  }
  0xe0   :  { %s4585_s1 = smov [#allocation24]   ;;  %s4586_s28 = smov [#allocation4]  }
  0xe1   :  { %s361_s8 = sshll.u32 %s4585_s1, 4  ;;  %s217_s2 = sshll.u32 %s4586_s28, 4  ;;  %s362_s8 = int_to_ptr.vmem [resolvable:$true] %s361_s8  ;;  %s218_s2 = int_to_ptr.vmem [resolvable:$true] %s217_s2 }
  0xe2   :  { %s4280_s7 = scalar_lea.hbm %s4888_s3, 16 }
  0xe3   :  { %p4281_p6 = scmp.ne.s32.totalorder %s4888_s3, %s4280_s7  ;;  %p4284_p7 = scmp.lt.u32.totalorder %s4280_s7, %s4888_s3 }
  0xe5   :  { %p4286_p8 = pnand %p4284_p7, %p4281_p6 }
  0xe7   :  { %4289 = shalt.err (!%p4286_p8)
}
  0xe8   :  { %s4290_s10 = scalar_lea.vmem %s362_s8, 16  ;;  %s4294_s20 = scalar_lea.vmem %s362_s8, 32 }
  0xe9   :  { %p4291_p9 = scmp.ne.s32.totalorder %s362_s8, %s4290_s10  ;;  %p4295_p10 = scmp.lt.s32.totalorder %s362_s8, %s362_s8 }
  0xea   :  { %p4296_p11 = scmp.lt.s32.totalorder %s4294_s20, %s4290_s10 }
  0xec   :  { %p4297_p12 = por %p4296_p11, %p4295_p10 }
  0xee   :  { %p4298_p13 = pnand %p4297_p12, %p4291_p9 }
  0xf0   :  { %4301 = shalt.err (!%p4298_p13)
}
  0xf1   :  { %364 = dma.hbm_to_vmem [thread:$0]  %s4888_s3, 16, %s362_s8, [#allocation25]  }
  0xf2   :  { %s4302_s24 = scalar_lea.hbm %s4788_s9, 16 }
  0xf3   :  { %p4303_p0 = scmp.ne.s32.totalorder %s4788_s9, %s4302_s24  ;;  %p4306_p1 = scmp.lt.u32.totalorder %s4302_s24, %s4788_s9 }
  0xf5   :  { %p4308_p2 = pnand %p4306_p1, %p4303_p0 }
  0xf7   :  { %4311 = shalt.err (!%p4308_p2)
}
  0xf8   :  { %s4312_s11 = scalar_lea.vmem %s218_s2, 16  ;;  %s4316_s15 = scalar_lea.vmem %s218_s2, 32 }
  0xf9   :  { %p4313_p3 = scmp.ne.s32.totalorder %s218_s2, %s4312_s11  ;;  %p4317_p4 = scmp.lt.s32.totalorder %s218_s2, %s218_s2 }
  0xfa   :  { %p4318_p5 = scmp.lt.s32.totalorder %s4316_s15, %s4312_s11 }
  0xfc   :  { %p4319_p6 = por %p4318_p5, %p4317_p4 }
  0xfe   :  { %p4320_p7 = pnand %p4319_p6, %p4313_p3 }
 0x100   :  { %4323 = shalt.err (!%p4320_p7)
}
 0x101   :  { %220 = dma.hbm_to_vmem [thread:$0]  %s4788_s9, 16, %s218_s2, [#allocation5]  }
 0x102   :  { %s4587_s0 = smov [#allocation8]   ;;  %s4588_s12 = smov [#allocation11]  }
 0x103   :  { %s237_s3 = sshll.u32 %s4587_s0, 4  ;;  %s261_s17 = sshll.u32 %s4588_s12, 4  ;;  %s238_s3 = int_to_ptr.vmem [resolvable:$true] %s237_s3  ;;  %s262_s17 = int_to_ptr.vmem [resolvable:$true] %s261_s17 }
 0x104   :  { %s4324_s16 = scalar_lea.hbm %s4798_s13, 16 }
 0x105   :  { %p4325_p8 = scmp.ne.s32.totalorder %s4798_s13, %s4324_s16  ;;  %p4328_p9 = scmp.lt.u32.totalorder %s4324_s16, %s4798_s13 }
 0x107   :  { %p4330_p10 = pnand %p4328_p9, %p4325_p8 }
 0x109   :  { %4333 = shalt.err (!%p4330_p10)
}
 0x10a   :  { %s4334_s18 = scalar_lea.vmem %s238_s3, 16  ;;  %s4338_s22 = scalar_lea.vmem %s238_s3, 32 }
 0x10b   :  { %p4335_p11 = scmp.ne.s32.totalorder %s238_s3, %s4334_s18  ;;  %p4339_p12 = scmp.lt.s32.totalorder %s238_s3, %s238_s3 }
 0x10c   :  { %p4340_p13 = scmp.lt.s32.totalorder %s4338_s22, %s4334_s18 }
 0x10e   :  { %p4341_p0 = por %p4340_p13, %p4339_p12 }
 0x110   :  { %p4342_p1 = pnand %p4341_p0, %p4335_p11 }
 0x112   :  { %4345 = shalt.err (!%p4342_p1)
}
 0x113   :  { %240 = dma.hbm_to_vmem [thread:$0]  %s4798_s13, 16, %s238_s3, [#allocation7]  }
 0x114   :  { %s4346_s9 = scalar_lea.hbm %s4818_s4, 16 }
 0x115   :  { %p4347_p2 = scmp.ne.s32.totalorder %s4818_s4, %s4346_s9  ;;  %p4350_p3 = scmp.lt.u32.totalorder %s4346_s9, %s4818_s4 }
 0x117   :  { %p4352_p4 = pnand %p4350_p3, %p4347_p2 }
 0x119   :  { %4355 = shalt.err (!%p4352_p4)
}
 0x11a   :  { %s4356_s23 = scalar_lea.vmem %s262_s17, 16  ;;  %s4360_s6 = scalar_lea.vmem %s262_s17, 32 }
 0x11b   :  { %p4357_p5 = scmp.ne.s32.totalorder %s262_s17, %s4356_s23  ;;  %p4361_p6 = scmp.lt.s32.totalorder %s262_s17, %s262_s17 }
 0x11c   :  { %p4362_p7 = scmp.lt.s32.totalorder %s4360_s6, %s4356_s23 }
 0x11e   :  { %p4363_p8 = por %p4362_p7, %p4361_p6 }
 0x120   :  { %p4364_p9 = pnand %p4363_p8, %p4357_p5 }
 0x122   :  { %4367 = shalt.err (!%p4364_p9)
}
 0x123   :  { %264 = dma.hbm_to_vmem [thread:$0]  %s4818_s4, 16, %s262_s17, [#allocation10]  }
 0x124   :  { %s4589_s26 = smov [#allocation14]   ;;  %s4590_s25 = smov [#allocation17]  }
 0x125   :  { %s283_s13 = sshll.u32 %s4589_s26, 4  ;;  %s305_s1 = sshll.u32 %s4590_s25, 4  ;;  %s284_s13 = int_to_ptr.vmem [resolvable:$true] %s283_s13  ;;  %s306_s1 = int_to_ptr.vmem [resolvable:$true] %s305_s1 }
 0x126   :  { %s4368_s8 = scalar_lea.hbm %s4833_s29, 16 }
 0x127   :  { %p4369_p10 = scmp.ne.s32.totalorder %s4833_s29, %s4368_s8  ;;  %p4372_p11 = scmp.lt.u32.totalorder %s4368_s8, %s4833_s29 }
 0x129   :  { %p4374_p12 = pnand %p4372_p11, %p4369_p10 }
 0x12b   :  { %4377 = shalt.err (!%p4374_p12)
}
 0x12c   :  { %s4378_s28 = scalar_lea.vmem %s284_s13, 16  ;;  %s4382_s2 = scalar_lea.vmem %s284_s13, 32 }
 0x12d   :  { %p4379_p13 = scmp.ne.s32.totalorder %s284_s13, %s4378_s28  ;;  %p4383_p0 = scmp.lt.s32.totalorder %s284_s13, %s284_s13 }
 0x12e   :  { %p4384_p1 = scmp.lt.s32.totalorder %s4382_s2, %s4378_s28 }
 0x130   :  { %p4385_p2 = por %p4384_p1, %p4383_p0 }
 0x132   :  { %p4386_p3 = pnand %p4385_p2, %p4379_p13 }
 0x134   :  { %4389 = shalt.err (!%p4386_p3)
}
 0x135   :  { %286 = dma.hbm_to_vmem [thread:$0]  %s4833_s29, 16, %s284_s13, [#allocation13]  }
 0x136   :  { %s4390_s4 = scalar_lea.hbm %s4848_s30, 16 }
 0x137   :  { %p4391_p4 = scmp.ne.s32.totalorder %s4848_s30, %s4390_s4  ;;  %p4394_p5 = scmp.lt.u32.totalorder %s4390_s4, %s4848_s30 }
 0x139   :  { %p4396_p6 = pnand %p4394_p5, %p4391_p4 }
 0x13b   :  { %4399 = shalt.err (!%p4396_p6)
}
 0x13c   :  { %s4400_s7 = scalar_lea.vmem %s306_s1, 16  ;;  %s4404_s10 = scalar_lea.vmem %s306_s1, 32 }
 0x13d   :  { %p4401_p7 = scmp.ne.s32.totalorder %s306_s1, %s4400_s7  ;;  %p4405_p8 = scmp.lt.s32.totalorder %s306_s1, %s306_s1 }
 0x13e   :  { %p4406_p9 = scmp.lt.s32.totalorder %s4404_s10, %s4400_s7 }
 0x140   :  { %p4407_p10 = por %p4406_p9, %p4405_p8 }
 0x142   :  { %p4408_p11 = pnand %p4407_p10, %p4401_p7 }
 0x144   :  { %4411 = shalt.err (!%p4408_p11)
}
 0x145   :  { %308 = dma.hbm_to_vmem [thread:$0]  %s4848_s30, 16, %s306_s1, [#allocation16]  }
 0x146   :  { %s4591_s20 = smov [#allocation20]   ;;  %s4592_s24 = smov [#allocation23]  }
 0x147   :  { %s327_s29 = sshll.u32 %s4591_s20, 4  ;;  %s349_s11 = sshll.u32 %s4592_s24, 4  ;;  %s328_s29 = int_to_ptr.vmem [resolvable:$true] %s327_s29  ;;  %s350_s11 = int_to_ptr.vmem [resolvable:$true] %s349_s11 }
 0x148   :  { %s4412_s15 = scalar_lea.hbm %s4863_s27, 16 }
 0x149   :  { %p4413_p12 = scmp.ne.s32.totalorder %s4863_s27, %s4412_s15  ;;  %p4416_p13 = scmp.lt.u32.totalorder %s4412_s15, %s4863_s27 }
 0x14b   :  { %p4418_p0 = pnand %p4416_p13, %p4413_p12 }
 0x14d   :  { %4421 = shalt.err (!%p4418_p0)
}
 0x14e   :  { %s4422_s0 = scalar_lea.vmem %s328_s29, 16  ;;  %s4426_s3 = scalar_lea.vmem %s328_s29, 32 }
 0x14f   :  { %p4423_p1 = scmp.ne.s32.totalorder %s328_s29, %s4422_s0  ;;  %p4427_p2 = scmp.lt.s32.totalorder %s328_s29, %s328_s29 }
 0x150   :  { %p4428_p3 = scmp.lt.s32.totalorder %s4426_s3, %s4422_s0 }
 0x152   :  { %p4429_p4 = por %p4428_p3, %p4427_p2 }
 0x154   :  { %p4430_p5 = pnand %p4429_p4, %p4423_p1 }
 0x156   :  { %4433 = shalt.err (!%p4430_p5)
}
 0x157   :  { %330 = dma.hbm_to_vmem [thread:$0]  %s4863_s27, 16, %s328_s29, [#allocation19]  }
 0x158   :  { %s4434_s30 = scalar_lea.hbm %s4878_s21, 16 }
 0x159   :  { %p4435_p6 = scmp.ne.s32.totalorder %s4878_s21, %s4434_s30  ;;  %p4438_p7 = scmp.lt.u32.totalorder %s4434_s30, %s4878_s21 }
 0x15b   :  { %p4440_p8 = pnand %p4438_p7, %p4435_p6 }
 0x15d   :  { %4443 = shalt.err (!%p4440_p8)
}
 0x15e   :  { %s4444_s12 = scalar_lea.vmem %s350_s11, 16  ;;  %s4448_s17 = scalar_lea.vmem %s350_s11, 32 }
 0x15f   :  { %p4445_p9 = scmp.ne.s32.totalorder %s350_s11, %s4444_s12  ;;  %p4449_p10 = scmp.lt.s32.totalorder %s350_s11, %s350_s11 }
 0x160   :  { %p4450_p11 = scmp.lt.s32.totalorder %s4448_s17, %s4444_s12 }
 0x162   :  { %p4451_p12 = por %p4450_p11, %p4449_p10 }
 0x164   :  { %p4452_p13 = pnand %p4451_p12, %p4445_p9 }
 0x166   :  { %4455 = shalt.err (!%p4452_p13)
}
 0x167   :  { %s5435_s16 = sld [smem:[#allocation81_spill]]  ;;  %s4593_s18 = smov [#allocation26]  }
 0x168   :  { %352 = dma.hbm_to_vmem [thread:$0]  %s4878_s21, 16, %s350_s11, [#allocation22]  }
 0x169   :  { %s371_s27 = sshll.u32 %s4593_s18, 4  ;;  %s4594_s22 = smov [#allocation27]   ;;  %s372_s27 = int_to_ptr.vmem [resolvable:$true] %s371_s27 }
 0x16a   :  { %s381_s9 = sshll.u32 %s4594_s22, 4  ;;  %s382_s9 = int_to_ptr.vmem [resolvable:$true] %s381_s9 }
 0x16d   :  { %s4456_s23 = scalar_lea.hbm %s5435_s16, 16 }
 0x16e   :  { %p4457_p0 = scmp.ne.s32.totalorder %s5435_s16, %s4456_s23  ;;  %p4460_p1 = scmp.lt.u32.totalorder %s4456_s23, %s5435_s16 }
 0x170   :  { %p4462_p2 = pnand %p4460_p1, %p4457_p0 }
 0x172   :  { %4465 = shalt.err (!%p4462_p2)
}
 0x173   :  { %s4466_s6 = scalar_lea.vmem %s372_s27, 16  ;;  %s4470_s26 = scalar_lea.vmem %s372_s27, 32 }
 0x174   :  { %p4467_p3 = scmp.ne.s32.totalorder %s372_s27, %s4466_s6  ;;  %p4471_p4 = scmp.lt.s32.totalorder %s372_s27, %s372_s27 }
 0x175   :  { %p4472_p5 = scmp.lt.s32.totalorder %s4470_s26, %s4466_s6 }
 0x177   :  { %p4473_p6 = por %p4472_p5, %p4471_p4 }
 0x179   :  { %p4474_p7 = pnand %p4473_p6, %p4467_p3 }
 0x17b   :  { %4477 = shalt.err (!%p4474_p7)
}
 0x17c   :  { %374 = dma.hbm_to_vmem [thread:$0]  %s5435_s16, 16, %s372_s27, [#allocation25]  }
 0x17d   :  { %s4478_s21 = scalar_lea.hbm %s4898_s5, 16 }
 0x17e   :  { %p4479_p8 = scmp.ne.s32.totalorder %s4898_s5, %s4478_s21  ;;  %p4482_p9 = scmp.lt.u32.totalorder %s4478_s21, %s4898_s5 }
 0x180   :  { %p4484_p10 = pnand %p4482_p9, %p4479_p8 }
 0x182   :  { %4487 = shalt.err (!%p4484_p10)
}
 0x183   :  { %s4488_s13 = scalar_lea.vmem %s382_s9, 16  ;;  %s4492_s25 = scalar_lea.vmem %s382_s9, 32 }
 0x184   :  { %p4489_p11 = scmp.ne.s32.totalorder %s382_s9, %s4488_s13  ;;  %p4493_p12 = scmp.lt.s32.totalorder %s382_s9, %s382_s9 }
 0x185   :  { %p4494_p13 = scmp.lt.s32.totalorder %s4492_s25, %s4488_s13 }
 0x187   :  { %p4495_p0 = por %p4494_p13, %p4493_p12 }
 0x189   :  { %p4496_p1 = pnand %p4495_p0, %p4489_p11 }
 0x18b   :  { %4499 = shalt.err (!%p4496_p1)
}
 0x18c   :  { %384 = dma.hbm_to_vmem [thread:$0]  %s4898_s5, 16, %s382_s9, [#allocation28]  }
 0x18d   :  { %4500 = dma.done.wait [#allocation5], 16  }
 0x18e   :  { %4501 = vsyncadd [#allocation5], 4294967280 }
 0x18f   :  { %4502 = dma.done.wait [#allocation7], 32  }
 0x190   :  { %4503 = vsyncadd [#allocation7], 4294967264 }
 0x191   :  { %4504 = dma.done.wait [#allocation10], 32  }
 0x192   :  { %4505 = vsyncadd [#allocation10], 4294967264 }
 0x193   :  { %4506 = dma.done.wait [#allocation13], 32  }
 0x194   :  { %4507 = vsyncadd [#allocation13], 4294967264 }
 0x195   :  { %4508 = dma.done.wait [#allocation16], 32  }
 0x196   :  { %4509 = vsyncadd [#allocation16], 4294967264 }
 0x197   :  { %4510 = dma.done.wait [#allocation19], 32  }
 0x198   :  { %4511 = vsyncadd [#allocation19], 4294967264 }
 0x199   :  { %4512 = dma.done.wait [#allocation22], 32  }
 0x19a   :  { %4513 = vsyncadd [#allocation22], 4294967264 }
 0x19b   :  { %4514 = dma.done.wait [#allocation25], 32  }
 0x19c   :  { %4515 = vsyncadd [#allocation25], 4294967264 }
 0x19d   :  { %4516 = dma.done.wait [#allocation28], 16  }
 0x19e   :  { %4517 = vsyncadd [#allocation28], 4294967280  ;;  %s5436_s1 = sld [smem:[#allocation41_spill]]  ;;  %s5437_s5 = sld [smem:[#allocation38_spill]]  ;;  %v4595_v1 = vmov 0.0|0.0   ;;  %vm618_vm0 = vcmask 130048  }
 0x19f   :  { %3820 = vmatprep.subr.bf16.mxu0 %v4595_v1  ;;  %s5438_s8 = sld [smem:[#allocation45_spill]]  ;;  %s5439_s28 = sld [smem:[#allocation47_spill]]  ;;  %vm708_vm1 = vcmask 261120   ;;  %v4596_v58 = vmov 0.0   ;;  %vm4597_vm2 = vmmov 0   ;;  %vm1106_vm3 = vcmask 64512  }
 0x1a0   :  { %s5440_s2 = sld [smem:[#allocation42_spill]]  ;;  %s5441_s4 = sld [smem:[#allocation49_spill]]  ;;  %vm1652_vm4 = vcmask 588800   ;;  %vm2434_vm5 = vcmask 1041408   ;;  %vm2430_vm6 = vcmask 15360   ;;  %vm2668_vm7 = vcmask 254976  }
 0x1a1   :  { %s5442_s7 = sld [smem:[#allocation46_spill]]  ;;  %s5443_s10 = sld [smem:[#allocation48_spill]]  ;;  %vm2700_vm8 = vcmask 1041409   ;;  %vm2708_vm9 = vcmask 517376   ;;  %vm2714_vm10 = vcmask 779776   ;;  %vm2723_vm11 = vcmask 785408  }
 0x1a2   :  { %s5444_s20 = sld [smem:[#allocation50_spill]]  ;;  %s5445_s29 = sld [smem:[#allocation51_spill]]  ;;  %vm2877_vm12 = vcmask 779264   ;;  %vm3176_vm13 = vcmask 1024  }
 0x1a3   :  { %s5446_s24 = sld [smem:[#allocation52_spill]]  ;;  %s5447_s11 = sld [smem:[#allocation55_spill]] }
 0x1a4   :  { %v443_v2 = vld [vmem:[%s5436_s1] sm:$0xff]  ;;  %v444_v3 = vld [vmem:[%s5436_s1 + $0x8] sm:$0xff]  ;;  %v445_v4 = vld [vmem:[%s5436_s1 + $0x10] sm:$0xff]  ;;  %s5448_s15 = sld [smem:[#allocation57_spill]]  ;;  %s5449_s0 = sld [smem:[#allocation53_spill]] }
 0x1a5   :  { %v3821_v5 = vpack.c.bf16 %v444_v3, %v443_v2  ;;  %v446_v6 = vld [vmem:[%s5436_s1 + $0x18] sm:$0xff]  ;;  %v447_v8 = vld [vmem:[%s5436_s1 + $0x20] sm:$0xff]  ;;  %v448_v9 = vld [vmem:[%s5436_s1 + $0x28] sm:$0xff]  ;;  %s5450_s3 = sld [smem:[#allocation54_spill]]  ;;  %s5451_s30 = sld [smem:[#allocation43_spill]] }
 0x1a6   :  { %v3824_v7 = vpack.c.bf16 %v446_v6, %v445_v4  ;;  %v438_v10 = vld [vmem:[%s5437_s5 + $0x8] sm:$0xff]  ;;  %v3827_v11 = vpack.c.bf16 %v448_v9, %v447_v8  ;;  %v472_v12 = vld [vmem:[%s5438_s8] sm:$0xff]  ;;  %v449_v14 = vld [vmem:[%s5436_s1 + $0x30] sm:$0xff]  ;;  %s5452_s12 = sld [smem:[#allocation39_spill]]  ;;  %s5453_s17 = sld [smem:[#allocation65_spill]] }
 0x1a7   :  { %3822 = vmatpush1.bf16.msra.mxu0 %v3821_v5  ;;  %3252 = vmatprep.mubr.msk.f32.mxu0 %vm618_vm0, %v438_v10  ;;  %v473_v13 = vld [vmem:[%s5438_s8 + $0x8] sm:$0xff]  ;;  %v450_v15 = vld [vmem:[%s5436_s1 + $0x38] sm:$0xff]  ;;  %v451_v18 = vld [vmem:[%s5436_s1 + $0x40] sm:$0xff]  ;;  %s5454_s16 = sld [smem:[#allocation56_spill]]  ;;  %s5455_s18 = sld [smem:[#allocation61_spill]] }
 0x1a8   :  { %3823 = vmatprep.subr.bf16.mxu0 %v4595_v1  ;;  %v3847_v16 = vpack.c.bf16 %v473_v13, %v472_v12  ;;  %v3830_v17 = vpack.c.bf16 %v450_v15, %v449_v14  ;;  %v452_v19 = vld [vmem:[%s5436_s1 + $0x48] sm:$0xff]  ;;  %v453_v21 = vld [vmem:[%s5436_s1 + $0x50] sm:$0xff]  ;;  %v454_v22 = vld [vmem:[%s5436_s1 + $0x58] sm:$0xff]  ;;  %s5456_s27 = sld [smem:[#allocation63_spill]]  ;;  %s5457_s22 = sld [smem:[#allocation44_spill]] }
 0x1a9   :  { %v3833_v20 = vpack.c.bf16 %v452_v19, %v451_v18  ;;  %v3836_v23 = vpack.c.bf16 %v454_v22, %v453_v21  ;;  %v455_v24 = vld [vmem:[%s5436_s1 + $0x60] sm:$0xff]  ;;  %v456_v25 = vld [vmem:[%s5436_s1 + $0x68] sm:$0xff]  ;;  %v457_v27 = vld [vmem:[%s5436_s1 + $0x70] sm:$0xff]  ;;  %s5458_s9 = sld [smem:[#allocation66_spill]]  ;;  %s5459_s23 = sld [smem:[#allocation62_spill]] }
 0x1aa   :  { %3848 = vmatprep.subr.bf16.mxu1 %v3847_v16  ;;  %v3839_v26 = vpack.c.bf16 %v456_v25, %v455_v24  ;;  %v458_v28 = vld [vmem:[%s5436_s1 + $0x78] sm:$0xff]  ;;  %v459_v30 = vld [vmem:[%s5436_s1 + $0x80] sm:$0xff]  ;;  %v460_v31 = vld [vmem:[%s5436_s1 + $0x88] sm:$0xff]  ;;  %s5460_s6 = sld [smem:[#allocation64_spill]]  ;;  %s5461_s26 = sld [smem:[#allocation67_spill]] }
 0x1ab   :  { %3825 = vmatpush1.bf16.msra.mxu0 %v3824_v7  ;;  %3850 = vmatpush3.bf16.msra.mxu1 %v3847_v16  ;;  %v3842_v29 = vpack.c.bf16 %v458_v28, %v457_v27  ;;  %v3845_v32 = vpack.c.bf16 %v460_v31, %v459_v30  ;;  %v437_v33 = vld [vmem:[%s5437_s5] sm:$0xff]  ;;  %v440_v34 = vld [vmem:[%s5437_s5 + $0x18] sm:$0xff]  ;;  %v439_v35 = vld [vmem:[%s5437_s5 + $0x10] sm:$0xff]  ;;  %s5462_s21 = sld [smem:[#allocation68_spill]]  ;;  %s5463_s13 = sld [smem:[#allocation71_spill]] }
 0x1ac   :  { %3826 = vmatprep.subr.bf16.mxu0 %v4595_v1  ;;  %v474_v36 = vld [vmem:[%s5438_s8 + $0x10] sm:$0xff]  ;;  %v475_v37 = vld [vmem:[%s5438_s8 + $0x18] sm:$0xff]  ;;  %v477_v39 = vld [vmem:[%s5439_s28] sm:$0xff]  ;;  %s5464_s25 = sld [smem:[#allocation73_spill]]  ;;  %s5465_s1 = sld [smem:[#allocation69_spill]] }
 0x1ad   :  { %v3851_v38 = vpack.c.bf16 %v475_v37, %v474_v36  ;;  %v478_v40 = vld [vmem:[%s5439_s28 + $0x8] sm:$0xff]  ;;  %v461_v42 = vld [vmem:[%s5440_s2] sm:$0xff]  ;;  %v479_v46 = vld [vmem:[%s5439_s28 + $0x10] sm:$0xff]  ;;  %s5466_s5 = sld [smem:[#allocation70_spill]]  ;;  %s5467_s8 = sld [smem:[#allocation74_spill]] }
 0x1ae   :  { %v3855_v41 = vpack.c.bf16 %v478_v40, %v477_v39  ;;  %v480_v47 = vld [vmem:[%s5439_s28 + $0x18] sm:$0xff]  ;;  %v482_v52 = vld [vmem:[%s5441_s4] sm:$0xff]  ;;  %v483_v53 = vld [vmem:[%s5441_s4 + $0x8] sm:$0xff]  ;;  %s5468_s28 = sld [smem:[#allocation40_spill]]  ;;  %s5469_s2 = sld [smem:[#allocation75_spill]] }
 0x1af   :  { %3828 = vmatpush1.bf16.msra.mxu0 %v3827_v11  ;;  %3852 = vmatprep.subr.bf16.mxu1 %v3851_v38  ;;  %v3859_v51 = vpack.c.bf16 %v480_v47, %v479_v46  ;;  %v3863_v54 = vpack.c.bf16 %v483_v53, %v482_v52  ;;  %v484_v55 = vld [vmem:[%s5441_s4 + $0x10] sm:$0xff]  ;;  %v485_v56 = vld [vmem:[%s5441_s4 + $0x18] sm:$0xff]  ;;  %v3254_v61 = vld [vmem:[%s5442_s7] ss:$0 sm:$0xff]  ;;  %s5470_s4 = sld [smem:[#allocation72_spill]]  ;;  %s5471_s7 = sld [smem:[#allocation76_spill]] }
 0x1b0   :  { %3829 = vmatprep.subr.bf16.mxu0 %v4595_v1  ;;  %3854 = vmatpush3.bf16.msra.mxu1 %v3851_v38  ;;  %v3867_v57 = vpack.c.bf16 %v485_v56, %v484_v55  ;;  %v3257_v62 = vld [vmem:[%s5443_s10] ss:$0 sm:$0xff]  ;;  %v489_v38 = vld [vmem:[%s5445_s29 + $0x10] sm:$0xff]  ;;  %v490_v39 = vld [vmem:[%s5445_s29 + $0x18] sm:$0xff]  ;;  %s5472_s10 = sld [smem:[#allocation58_spill]] }
 0x1b1   :  { %3856 = vmatprep.subr.bf16.mxu1 %v3855_v41  ;;  %v3260_v7 = vld [vmem:[%s5444_s20] ss:$0 sm:$0xff]  ;;  %v3875_v40 = vpack.c.bf16 %v490_v39, %v489_v38  ;;  %v467_v38 = vld [vmem:[%s5451_s30 + $0x28] sm:$0xff]  ;;  %s5473_s20 = sld [smem:[#allocation77_spill]] }
 0x1b2   :  { %v487_v31 = vld [vmem:[%s5445_s29] sm:$0xff] }
 0x1b3   :  { %3831 = vmatpush1.bf16.msra.mxu0 %v3830_v17  ;;  %v3269_v46 = vld [vmem:[%s5446_s24] ss:$0 sm:$0xff]  ;;  %s5474_s24 = sld [smem:[#allocation78_spill]] }
 0x1b4   :  { %3832 = vmatprep.subr.bf16.mxu0 %v4595_v1 }
 0x1b7   :  { %3834 = vmatpush1.bf16.msra.mxu0 %v3833_v20 }
 0x1b8   :  { %3835 = vmatprep.subr.bf16.mxu0 %v4595_v1 }
 0x1bb   :  { %3837 = vmatpush1.bf16.msra.mxu0 %v3836_v23 }
 0x1bc   :  { %3838 = vmatprep.subr.bf16.mxu0 %v4595_v1 }
 0x1bf   :  { %3840 = vmatpush1.bf16.msra.mxu0 %v3839_v26 }
 0x1c0   :  { %3841 = vmatprep.subr.bf16.mxu0 %v4595_v1 }
 0x1c3   :  { %3843 = vmatpush1.bf16.msra.mxu0 %v3842_v29 }
 0x1c4   :  { %3844 = vmatprep.subr.bf16.mxu0 %v4595_v1 }
 0x1c7   :  { %3846 = vmatpush1.bf16.msra.mxu0 %v3845_v32  ;;  %v488_v32 = vld [vmem:[%s5445_s29 + $0x8] sm:$0xff]  ;;  %s4598_s29 = smov 32  }
 0x1ca   :  { %690 = vmatmul.mubr.f32.vlgmr.msra.gmra.mrb[0].mxu0 %v437_v33 }
 0x1cb   :  { %3253 = vmatprep.mubr.msk.f32.mxu0 %vm618_vm0, %v440_v34 }
 0x1ce   :  { %695 = vmatmul.mubr.f32.gmra.mrb[2].mxu0 %v439_v35  ;;  %v3871_v35 = vpack.c.bf16 %v488_v32, %v487_v31 }
 0x29d   :  { %v691_v43 = vpop.f32.mrb[0].mxu0 }
 0x29e   :  { %v5017_v44 = vadd.f32 %v691_v43, %v461_v42  ;;  %v693_v45 = vpop.f32.mrb[1].mxu0 }
 0x2a0   :  { %3493 = vmatprep.mubr.msk.f32.mxu1 %vm708_vm1, %v5017_v44 }
 0x2a1   :  { %v696_v48 = vpop.f32.mrb[2].mxu0 }
 0x2a2   :  { %v5023_v49 = vadd.f32 %v696_v48, %v461_v42  ;;  %v698_v50 = vpop.f32.mrb[3].mxu0 }
 0x2a4   :  { %3494 = vmatmul.mubr.msk.f32.vlgmr.msra.gmra.mrb[0].mxu1 %vm708_vm1, %v5023_v49 }
 0x2a5   :  { %3858 = vmatpush3.bf16.msra.mxu1 %v3855_v41  ;;  %3504 = vmatprep.mubr.msk.f32.mxu1 %vm708_vm1, %v5017_v44 }
 0x2a6   :  { %3860 = vmatprep.subr.bf16.mxu1 %v3859_v51 }
 0x2a9   :  { %3862 = vmatpush3.bf16.msra.mxu1 %v3859_v51 }
 0x2aa   :  { %3864 = vmatprep.subr.bf16.mxu1 %v3863_v54 }
 0x2ac   :  { %3505 = vmatmul.mubr.msk.f32.vlgmr.msra.gmra.mrb[2].mxu1 %vm708_vm1, %v5023_v49 }
 0x2ad   :  { %3866 = vmatpush3.bf16.msra.mxu1 %v3863_v54  ;;  %3515 = vmatprep.mubr.msk.f32.mxu1 %vm708_vm1, %v5017_v44 }
 0x2ae   :  { %3868 = vmatprep.subr.bf16.mxu1 %v3867_v57 }
 0x2b1   :  { %3870 = vmatpush3.bf16.msra.mxu1 %v3867_v57 }
 0x2b2   :  { %3518 = vmatprep.subr.mxu1 %v4596_v58 }
 0x2b4   :  { %3516 = vmatmul.mubr.msk.f32.vlgmr.msra.gmra.mrb[4].mxu1 %vm708_vm1, %v5023_v49 }
 0x2b5   :  { %3520 = vmatprep.mubr.msk.f32.mxu1 %vm4597_vm2, %v4596_v58 }
 0x377   :  { %v3495_v59 = vpop.f32.mrb[0].mxu1 }
 0x378   :  { %v781_v60 = vpop.f32.mrb[1].mxu1  ;;  %v787_v4 = vadd.f32 %v3495_v59, %v3254_v61 }
 0x379   :  { %v782_v0 = vadd.f32 %v3254_v61, %v781_v60  ;;  %v495_v61 = vld [vmem:[%s5447_s11 + $0x8] sm:$0xff] }
 0x37a   :  { %v791_v9 = vmul.f32 0.17677669, %v787_v4 }
 0x37b   :  { %v790_v5 = vmul.f32 0.17677669, %v782_v0 }
 0x37f   :  { %v3506_v63 = vpop.f32.mrb[2].mxu1 }
 0x380   :  { %v864_v2 = vpop.f32.mrb[3].mxu1  ;;  %v870_v6 = vadd.f32 %v3506_v63, %v3257_v62  ;;  %v497_v63 = vld [vmem:[%s5447_s11 + $0x18] sm:$0xff] }
 0x381   :  { %v865_v3 = vadd.f32 %v3257_v62, %v864_v2  ;;  %v496_v62 = vld [vmem:[%s5447_s11 + $0x10] sm:$0xff]  ;;  %v499_v2 = vld [vmem:[%s5448_s15] sm:$0xff] }
 0x382   :  { %v3883_v0 = vpack.c.bf16 %v497_v63, %v496_v62 }
 0x383   :  { %3519 = vmatpush3.xpose.msk.msra.mxu1 %vm708_vm1, %v865_v3  ;;  %v500_v3 = vld [vmem:[%s5448_s15 + $0x8] sm:$0xff] }
 0x384   :  { %3523 = vmatprep.subr.mxu1 %v4596_v58  ;;  %v3887_v4 = vpack.c.bf16 %v500_v3, %v499_v2  ;;  %v508_v2 = vld [vmem:[%s5455_s18 + $0x10] sm:$0xff]  ;;  %v509_v3 = vld [vmem:[%s5455_s18 + $0x18] sm:$0xff] }
 0x386   :  { %3521 = vmatmul.mubr.msk.f32.vlgmr.msra.gmra.mrb[6].mxu1 %vm708_vm1, %v790_v5  ;;  %3888 = vmatprep.subr.bf16.mxu0 %v3887_v4 }
 0x387   :  { %v3517_v8 = vpop.f32.mrb[4].mxu1  ;;  %3524 = vmatpush3.xpose.msk.msra.mxu1 %vm708_vm1, %v870_v6  ;;  %3525 = vmatprep.mubr.msk.f32.mxu1 %vm4597_vm2, %v4596_v58 }
 0x388   :  { %v951_v10 = vadd.f32 %v3517_v8, %v3260_v7  ;;  %v945_v11 = vpop.f32.mrb[5].mxu1  ;;  %3528 = vmatprep.subr.mxu1 %v4596_v58  ;;  %3890 = vmatpush3.bf16.msra.mxu0 %v3887_v4  ;;  %v3911_v4 = vpack.c.bf16 %v509_v3, %v508_v2  ;;  %v533_v3 = vld [vmem:[%s5464_s25] sm:$0xff] }
 0x389   :  { %v946_v12 = vadd.f32 %v3260_v7, %v945_v11 }
 0x38a   :  { %3526 = vmatmul.mubr.msk.f32.vlgmr.msra.gmra.mrb[8].mxu1 %vm708_vm1, %v791_v9 }
 0x38b   :  { %3529 = vmatpush3.msra.mxu1 %v946_v12  ;;  %3530 = vmatprep.mubr.msk.f32.mxu1 %vm4597_vm2, %v4596_v58 }
 0x38c   :  { %3533 = vmatprep.subr.mxu1 %v4596_v58 }
 0x459   :  { %v1026_v13 = vpop.f32.mrb[6].mxu1 }
 0x45a   :  { %v3522_v14 = vpop.f32.mrb[7].mxu1  ;;  %v1107_v15 = vsel %vm1106_vm3, %v1026_v13, -inf }
 0x45b   :  { %1108 = vmax.xlane.f32.xlu0 %v1107_v15 }
 0x45d   :  { %v1102_v16 = vpop.f32.mrb[8].mxu1 }
 0x45e   :  { %v3527_v17 = vpop.f32.mrb[9].mxu1  ;;  %v1110_v18 = vsel %vm1106_vm3, %v1102_v16, -inf }
 0x45f   :  { %1111 = vmax.xlane.f32.xlu0 %v1110_v18 }
 0x4e8   :  { %v1109_v19 = vpop.xlane.xlu0 %1108 }
 0x4e9   :  { %v1113_v20 = vsub.f32 %v1026_v13, %v1109_v19 }
 0x4eb   :  { %v1115_v21 = vmul.f32 1.442695, %v1113_v20 }
 0x4ec   :  { %v1112_v22 = vpop.xlane.xlu0 %1111 }
 0x4ed   :  { %4118 = vpow2.f32 %v1115_v21  ;;  %v1114_v23 = vsub.f32 %v1102_v16, %v1112_v22  ;;  %v3272_v22 = vld [vmem:[%s5449_s0] ss:$0 sm:$0xff]  ;;  %s4599_s0 = smov 64  }
 0x4ef   :  { %v1117_v24 = vmul.f32 1.442695, %v1114_v23 }
 0x4f1   :  { %4120 = vpow2.f32 %v1117_v24 }
 0x4f7   :  { %v4119_v25 = vpop.eup %4118 }
 0x4f8   :  { %v1119_v26 = vsel %vm1106_vm3, %v4119_v25, 0.0 }
 0x4f9   :  { %1120 = vadd.xlane.f32.xlu1 %v1119_v26  ;;  %v3273_v26 = vld [vmem:[%s5450_s3] ss:$0 sm:$0xff]  ;;  %s5477_s3 = sld [smem:[#allocation79_spill]] }
 0x4fb   :  { %v4121_v27 = vpop.eup %4120 }
 0x4fc   :  { %v1122_v28 = vsel %vm1106_vm3, %v4121_v27, 0.0 }
 0x4fd   :  { %1123 = vadd.xlane.f32.xlu1 %v1122_v28  ;;  %v462_v28 = vld [vmem:[%s5451_s30] sm:$0xff] }
 0x586   :  { %v1121_v29 = vpop.xlane.xlu1 %1120 }
 0x587   :  { %4122 = vrcp.f32 %v1121_v29  ;;  %v463_v29 = vld [vmem:[%s5451_s30 + $0x8] sm:$0xff] }
 0x588   :  { %v3896_v32 = vpack.c.bf16 %v463_v29, %v462_v28 }
 0x58a   :  { %v1124_v30 = vpop.xlane.xlu1 %1123 }
 0x58b   :  { %4124 = vrcp.f32 %v1124_v30 }
 0x591   :  { %v4123_v33 = vpop.eup %4122 }
 0x592   :  { %v1127_v34 = vmul.f32 %v4123_v33, %v4119_v25 }
 0x594   :  { %3531 = vmatmul.mubr.msk.f32.vlgmr.msra.gmra.mrb[10].mxu1 %vm1106_vm3, %v1127_v34  ;;  %v464_v34 = vld [vmem:[%s5451_s30 + $0x10] sm:$0xff] }
 0x595   :  { %v4125_v36 = vpop.eup %4124  ;;  %3534 = vmatpush3.msra.mxu1 %v951_v10  ;;  %3535 = vmatprep.mubr.msk.f32.mxu1 %vm4597_vm2, %v4596_v58 }
 0x596   :  { %v1128_v37 = vmul.f32 %v4125_v36, %v4121_v27  ;;  %3872 = vmatprep.subr.bf16.mxu1 %v3871_v35 }
 0x598   :  { %3536 = vmatmul.mubr.msk.f32.vlgmr.msra.gmra.mrb[12].mxu1 %vm1106_vm3, %v1128_v37  ;;  %v466_v37 = vld [vmem:[%s5451_s30 + $0x20] sm:$0xff] }
 0x599   :  { %3874 = vmatpush3.bf16.msra.mxu1 %v3871_v35  ;;  %v465_v35 = vld [vmem:[%s5451_s30 + $0x18] sm:$0xff]  ;;  %v3902_v39 = vpack.c.bf16 %v467_v38, %v466_v37 }
 0x59a   :  { %3876 = vmatprep.subr.bf16.mxu1 %v3875_v40  ;;  %v3899_v36 = vpack.c.bf16 %v465_v35, %v464_v34 }
 0x59d   :  { %3878 = vmatpush3.bf16.msra.mxu1 %v3875_v40  ;;  %v468_v40 = vld [vmem:[%s5451_s30 + $0x30] sm:$0xff] }
 0x667   :  { %v1198_v41 = vpop.f32.mrb[10].mxu1 }
 0x668   :  { %v3532_v42 = vpop.f32.mrb[11].mxu1  ;;  %3546 = vmatprep.mubr.msk.f32.mxu1 %vm708_vm1, %v1198_v41  ;;  %v469_v41 = vld [vmem:[%s5451_s30 + $0x38] sm:$0xff] }
 0x669   :  { %v3905_v42 = vpack.c.bf16 %v469_v41, %v468_v40  ;;  %v521_v40 = vld [vmem:[%s5461_s26] sm:$0xff]  ;;  %v522_v41 = vld [vmem:[%s5461_s26 + $0x8] sm:$0xff] }
 0x66b   :  { %v1271_v43 = vpop.f32.mrb[12].mxu1 }
 0x66c   :  { %v3537_v45 = vpop.f32.mrb[13].mxu1  ;;  %3547 = vmatmul.mubr.msk.f32.vlgmr.msra.gmra.mrb[14].mxu1 %vm708_vm1, %v1271_v43  ;;  %v470_v43 = vld [vmem:[%s5451_s30 + $0x40] sm:$0xff]  ;;  %s5478_s30 = sld [smem:[#allocation80_spill]] }
 0x66d   :  { %v441_v45 = vld [vmem:[%s5452_s12] sm:$0xff] }
 0x73f   :  { %v3548_v47 = vpop.f32.mrb[14].mxu1 }
 0x740   :  { %v1359_v48 = vadd.f32 %v3548_v47, %v3269_v46  ;;  %v1353_v50 = vpop.f32.mrb[15].mxu1  ;;  %v502_v47 = vld [vmem:[%s5448_s15 + $0x18] sm:$0xff] }
 0x741   :  { %v1354_v51 = vadd.f32 %v3269_v46, %v1353_v50  ;;  %v501_v46 = vld [vmem:[%s5448_s15 + $0x10] sm:$0xff]  ;;  %v516_v50 = vld [vmem:[%s5453_s17] sm:$0xff]  ;;  %s5476_s15 = sld [smem:[#allocation60_spill]] }
 0x742   :  { %v1363_v52 = vadd.f32 %v1359_v48, %v5023_v49  ;;  %v494_v49 = vld [vmem:[%s5447_s11] sm:$0xff]  ;;  %v3891_v48 = vpack.c.bf16 %v502_v47, %v501_v46  ;;  %s5475_s11 = sld [smem:[#allocation59_spill]] }
 0x743   :  { %v1362_v53 = vadd.f32 %v1354_v51, %v5017_v44  ;;  %v3879_v44 = vpack.c.bf16 %v495_v61, %v494_v49  ;;  %v517_v51 = vld [vmem:[%s5453_s17 + $0x8] sm:$0xff]  ;;  %v506_v49 = vld [vmem:[%s5455_s18] sm:$0xff] }
 0x744   :  { %v1367_v54 = vsel %vm708_vm1, %v1363_v52, 0.0  ;;  %v1374_v55 = vmul.f32 %v1363_v52, %v1363_v52  ;;  %3892 = vmatprep.subr.bf16.mxu0 %v3891_v48  ;;  %v507_v61 = vld [vmem:[%s5455_s18 + $0x8] sm:$0xff] }
 0x745   :  { %1368 = vadd.xlane.f32.xlu1 %v1367_v54  ;;  %v1364_v56 = vsel %vm708_vm1, %v1362_v53, 0.0  ;;  %v1373_v57 = vmul.f32 %v1362_v53, %v1362_v53  ;;  %3880 = vmatprep.subr.bf16.mxu1 %v3879_v44  ;;  %v519_v54 = vld [vmem:[%s5453_s17 + $0x18] sm:$0xff]  ;;  %v3908_v63 = vpack.c.bf16 %v507_v61, %v506_v49  ;;  %v528_v61 = vld [vmem:[%s5463_s13] sm:$0xff] }
 0x746   :  { %1365 = vadd.xlane.f32.xlu0 %v1364_v56  ;;  %v1378_v59 = vsel %vm708_vm1, %v1374_v55, 0.0  ;;  %3882 = vmatpush3.bf16.msra.mxu1 %v3879_v44  ;;  %v3274_v56 = vld [vmem:[%s5454_s16] ss:$0 sm:$0xff] }
 0x747   :  { %v1375_v60 = vsel %vm708_vm1, %v1373_v57, 0.0  ;;  %3884 = vmatprep.subr.bf16.mxu1 %v3883_v0  ;;  %3894 = vmatpush3.bf16.msra.mxu0 %v3891_v48 }
 0x748   :  { %3907 = vmatprep.subr.bf16.mxu0 %v4595_v1 }
 0x749   :  { %1379 = vadd.xlane.f32.xlu1 %v1378_v59 }
 0x74a   :  { %1376 = vadd.xlane.f32.xlu0 %v1375_v60  ;;  %3886 = vmatpush3.bf16.msra.mxu1 %v3883_v0 }
 0x74b   :  { %3895 = vmatprep.subr.bf16.mxu1 %v4595_v1 }
 0x7d2   :  { %v1369_v5 = vpop.xlane.xlu1 %1368 }
 0x7d3   :  { %v1372_v6 = vmul.f32 0.03125, %v1369_v5  ;;  %v1366_v7 = vpop.xlane.xlu0 %1365  ;;  %v511_v5 = vld [vmem:[%s5456_s27] sm:$0xff] }
 0x7d4   :  { %v1371_v8 = vmul.f32 0.03125, %v1366_v7  ;;  %v471_v7 = vld [vmem:[%s5457_s22] sm:$0xff] }
 0x7d5   :  { %v1384_v10 = vmul.f32 %v1372_v6, %v1372_v6  ;;  %v1388_v19 = vsub.f32 %v1363_v52, %v1372_v6  ;;  %v3920_v52 = vpack.c.bf16 %v517_v51, %v516_v50  ;;  %v512_v6 = vld [vmem:[%s5456_s27 + $0x8] sm:$0xff] }
 0x7d6   :  { %v1380_v9 = vpop.xlane.xlu1 %1379  ;;  %v1383_v13 = vmul.f32 %v1371_v8, %v1371_v8  ;;  %v1387_v21 = vsub.f32 %v1362_v53, %v1371_v8  ;;  %v518_v53 = vld [vmem:[%s5453_s17 + $0x10] sm:$0xff] }
 0x7d7   :  { %v1382_v11 = vmul.f32 0.03125, %v1380_v9  ;;  %v1377_v12 = vpop.xlane.xlu0 %1376  ;;  %v3923_v55 = vpack.c.bf16 %v519_v54, %v518_v53  ;;  %v3914_v9 = vpack.c.bf16 %v512_v6, %v511_v5  ;;  %v3292_v53 = vld [vmem:[%s5462_s21] ss:$0 sm:$0xff] }
 0x7d8   :  { %v1381_v14 = vmul.f32 0.03125, %v1377_v12  ;;  %v513_v12 = vld [vmem:[%s5456_s27 + $0x10] sm:$0xff] }
 0x7d9   :  { %v1386_v15 = vsub.f32 %v1382_v11, %v1384_v10 }
 0x7da   :  { %v1385_v16 = vsub.f32 %v1381_v14, %v1383_v13  ;;  %v514_v13 = vld [vmem:[%s5456_s27 + $0x18] sm:$0xff] }
 0x7db   :  { %v1390_v17 = vadd.f32 1e-05, %v1386_v15  ;;  %v3917_v14 = vpack.c.bf16 %v514_v13, %v513_v12 }
 0x7dc   :  { %v1389_v18 = vadd.f32 1e-05, %v1385_v16 }
 0x7dd   :  { %4126 = vrsqrt.f32 %v1390_v17  ;;  %v3287_v17 = vld [vmem:[%s5458_s9] ss:$0 sm:$0xff] }
 0x7de   :  { %4128 = vrsqrt.f32 %v1389_v18 }
 0x7e7   :  { %v4127_v20 = vpop.eup %4126 }
 0x7e8   :  { %v4129_v23 = vpop.eup %4128  ;;  %v1394_v24 = vmul.f32 %v4127_v20, %v1388_v19 }
 0x7e9   :  { %v1393_v25 = vmul.f32 %v4129_v23, %v1387_v21  ;;  %v3283_v23 = vld [vmem:[%s5459_s23] ss:$0 sm:$0xff] }
 0x7ea   :  { %v1402_v27 = vmul.f32 %v3272_v22, %v1394_v24  ;;  %v3285_v24 = vld [vmem:[%s5460_s6] ss:$0 sm:$0xff] }
 0x7eb   :  { %v1401_v30 = vmul.f32 %v3272_v22, %v1393_v25 }
 0x7ec   :  { %v5090_v33 = vadd.f32 %v3273_v26, %v1402_v27 }
 0x7ed   :  { %v5088_v31 = vadd.f32 %v3273_v26, %v1401_v30 }
 0x7ef   :  { %3557 = vmatprep.mubr.msk.f32.mxu1 %vm708_vm1, %v5088_v31 }
 0x7f0   :  { %3558 = vmatmul.mubr.msk.f32.vlgmr.msra.gmra.mrb[16].mxu1 %vm708_vm1, %v5090_v33 }
 0x7f1   :  { %3897 = vmatpush3.bf16.msra.mxu1 %v3896_v32  ;;  %3589 = vmatprep.mubr.msk.f32.mxu1 %vm4597_vm2, %v4596_v58 }
 0x7f2   :  { %3898 = vmatprep.subr.bf16.mxu1 %v4595_v1 }
 0x7f5   :  { %3900 = vmatpush3.bf16.msra.mxu1 %v3899_v36 }
 0x7f6   :  { %3901 = vmatprep.subr.bf16.mxu1 %v4595_v1 }
 0x7f9   :  { %3903 = vmatpush3.bf16.msra.mxu1 %v3902_v39 }
 0x7fa   :  { %3904 = vmatprep.subr.bf16.mxu1 %v4595_v1 }
 0x7fd   :  { %3906 = vmatpush3.bf16.msra.mxu1 %v3905_v42  ;;  %v523_v42 = vld [vmem:[%s5461_s26 + $0x10] sm:$0xff] }
 0x7fe   :  { %3587 = vmatprep.subr.mxu1 %v4596_v58 }
 0x801   :  { %3588 = vmatpush3.msra.mxu1 %v470_v43  ;;  %v3926_v43 = vpack.c.bf16 %v522_v41, %v521_v40  ;;  %v544_v40 = vld [vmem:[%s5471_s7] sm:$0xff]  ;;  %v545_v41 = vld [vmem:[%s5471_s7 + $0x8] sm:$0xff] }
 0x802   :  { %3590 = vmatmul.mubr.msk.f32.vlgmr.msra.gmra.mrb[18].mxu1 %vm1652_vm4, %v441_v45  ;;  %3919 = vmatprep.subr.bf16.mxu1 %v4595_v1  ;;  %v524_v45 = vld [vmem:[%s5461_s26 + $0x18] sm:$0xff] }
 0x803   :  { %3622 = vmatprep.mubr.msk.f32.mxu1 %vm4597_vm2, %v4596_v58  ;;  %3921 = vmatpush3.bf16.msra.mxu1 %v3920_v52  ;;  %v3929_v46 = vpack.c.bf16 %v524_v45, %v523_v42  ;;  %v3944_v42 = vpack.c.bf16 %v545_v41, %v544_v40  ;;  %v553_v40 = vld [vmem:[%s5473_s20 + $0x20] sm:$0xff]  ;;  %v554_v41 = vld [vmem:[%s5473_s20 + $0x28] sm:$0xff] }
 0x804   :  { %3922 = vmatprep.subr.bf16.mxu1 %v4595_v1 }
 0x807   :  { %3924 = vmatpush3.bf16.msra.mxu1 %v3923_v55 }
 0x808   :  { %3625 = vmatprep.subr.mxu1 %v4596_v58 }
 0x8c3   :  { %v3559_v57 = vpop.f32.mrb[16].mxu1 }
 0x8c4   :  { %v1495_v59 = vadd.f32 %v3559_v57, %v3274_v56  ;;  %v1489_v60 = vpop.f32.mrb[17].mxu1 }
 0x8c5   :  { %v1490_v62 = vadd.f32 %v3274_v56, %v1489_v60 }
 0x8c6   :  { %v1499_v0 = vmax.f32 %v1495_v59, 0.0 }
 0x8c7   :  { %v1498_v44 = vmax.f32 %v1490_v62, 0.0  ;;  %v529_v62 = vld [vmem:[%s5463_s13 + $0x8] sm:$0xff] }
 0x8c9   :  { %3568 = vmatprep.mubr.msk.f32.mxu0 %vm708_vm1, %v1498_v44  ;;  %v3932_v44 = vpack.c.bf16 %v529_v62, %v528_v61 }
 0x8ca   :  { %3569 = vmatmul.mubr.msk.f32.vlgmr.msra.gmra.mrb[4].mxu0 %vm708_vm1, %v1499_v0  ;;  %v531_v0 = vld [vmem:[%s5463_s13 + $0x18] sm:$0xff] }
 0x8cb   :  { %3909 = vmatpush3.bf16.msra.mxu0 %v3908_v63  ;;  %3600 = vmatprep.mubr.msk.f32.mxu0 %vm4597_vm2, %v4596_v58  ;;  %v530_v63 = vld [vmem:[%s5463_s13 + $0x10] sm:$0xff] }
 0x8cc   :  { %3910 = vmatprep.subr.bf16.mxu0 %v4595_v1  ;;  %v3935_v2 = vpack.c.bf16 %v531_v0, %v530_v63 }
 0x8cf   :  { %3912 = vmatpush3.bf16.msra.mxu0 %v3911_v4  ;;  %v534_v4 = vld [vmem:[%s5464_s25 + $0x8] sm:$0xff] }
 0x8d0   :  { %3913 = vmatprep.subr.bf16.mxu0 %v4595_v1  ;;  %v3938_v5 = vpack.c.bf16 %v534_v4, %v533_v3  ;;  %v3300_v4 = vld [vmem:[#allocation6] ss:$0 sm:$0xff] }
 0x8d5   :  { %v1722_v8 = vpop.f32.mrb[18].mxu1 }
 0x8d6   :  { %v5136_v10 = vadd.f32 %v1722_v8, %v471_v7  ;;  %v3591_v11 = vpop.f32.mrb[19].mxu1 }
 0x8d8   :  { %3601 = vmatmul.mubr.msk.f32.vlgmr.msra.gmra.mrb[6].mxu0 %vm708_vm1, %v5136_v10  ;;  %3623 = vmatmul.mubr.msk.f32.vlgmr.msra.gmra.mrb[20].mxu1 %vm708_vm1, %v5136_v10 }
 0x8d9   :  { %3915 = vmatpush3.bf16.msra.mxu0 %v3914_v9  ;;  %3611 = vmatprep.mubr.msk.f32.mxu0 %vm4597_vm2, %v4596_v58 }
 0x8da   :  { %3916 = vmatprep.subr.bf16.mxu0 %v4595_v1  ;;  %3627 = vmatprep.mubr.msk.f32.mxu1 %vm4597_vm2, %v4596_v58 }
 0x8dd   :  { %3918 = vmatpush3.bf16.msra.mxu0 %v3917_v14 }
 0x8de   :  { %3630 = vmatprep.subr.mxu0 %v4596_v58 }
 0x8e0   :  { %3612 = vmatmul.mubr.msk.f32.vlgmr.msra.gmra.mrb[8].mxu0 %vm708_vm1, %v5136_v10 }
 0x8e1   :  { %3632 = vmatprep.mubr.msk.f32.mxu0 %vm4597_vm2, %v4596_v58 }
 0x99d   :  { %v5154_v15 = vpop.f32.mrb[4].mxu0 }
 0x99e   :  { %v5156_v16 = vpop.f32.mrb[5].mxu0 }
 0x9ab   :  { %v1801_v18 = vpop.f32.mrb[6].mxu0  ;;  %v1954_v19 = vpop.f32.mrb[20].mxu1 }
 0x9ac   :  { %v1955_v20 = vadd.f32 %v3287_v17, %v1954_v19  ;;  %v3602_v21 = vpop.f32.mrb[7].mxu0  ;;  %v3624_v22 = vpop.f32.mrb[21].mxu1  ;;  %v1802_v25 = vadd.f32 %v3283_v23, %v1801_v18  ;;  %v3294_v17 = vld [vmem:[%s5465_s1] ss:$0 sm:$0xff] }
 0x9ad   :  { %v3295_v19 = vld [vmem:[%s5466_s5] ss:$0 sm:$0xff] }
 0x9ae   :  { %3631 = vmatpush3.msra.mxu0 %v1955_v20  ;;  %v1805_v29 = vmul.f32 0.17677669, %v1802_v25  ;;  %v540_v22 = vld [vmem:[%s5467_s8] sm:$0x3]  ;;  %v536_v25 = vld [vmem:[%s5464_s25 + $0x18] sm:$0xff] }
 0x9af   :  { %3931 = vmatprep.subr.bf16.mxu0 %v4595_v1  ;;  %v442_v23 = vld [vmem:[%s5468_s28] sm:$0x3] }
 0x9b3   :  { %v1878_v26 = vpop.f32.mrb[8].mxu0 }
 0x9b4   :  { %v1879_v27 = vadd.f32 %v3285_v24, %v1878_v26  ;;  %v3613_v28 = vpop.f32.mrb[9].mxu0  ;;  %v535_v24 = vld [vmem:[%s5464_s25 + $0x10] sm:$0xff] }
 0x9b5   :  { %v3941_v26 = vpack.c.bf16 %v536_v25, %v535_v24  ;;  %v3296_v28 = vld [vmem:[%s5470_s4] ss:$0 sm:$0xff] }
 0x9b6   :  { %3626 = vmatpush3.xpose.msk.msra.mxu1 %vm708_vm1, %v1879_v27  ;;  %v542_v27 = vld [vmem:[%s5469_s2] sm:$0xff] }
 0x9b7   :  { %3925 = vmatprep.subr.bf16.mxu1 %v4595_v1 }
 0x9b9   :  { %3628 = vmatmul.mubr.msk.f32.vlgmr.msra.gmra.mrb[22].mxu1 %vm708_vm1, %v1805_v29 }
 0x9ba   :  { %3643 = vmatprep.mubr.msk.f32.mxu1 %vm4597_vm2, %v4596_v58  ;;  %3927 = vmatpush3.bf16.msra.mxu1 %v3926_v43  ;;  %v3298_v43 = vld [vmem:[#allocation4] ss:$0 sm:$0xff] }
 0x9bb   :  { %3928 = vmatprep.subr.bf16.mxu1 %v4595_v1 }
 0x9be   :  { %3930 = vmatpush3.bf16.msra.mxu1 %v3929_v46 }
 0x9bf   :  { %3937 = vmatprep.subr.bf16.mxu1 %v4595_v1 }
 0xa8c   :  { %v2030_v30 = vpop.f32.mrb[22].mxu1 }
 0xa8d   :  { %v3629_v32 = vpop.f32.mrb[23].mxu1  ;;  %v2034_v34 = vsel %vm1106_vm3, %v2030_v30, -inf }
 0xa8e   :  { %2035 = vmax.xlane.f32.xlu0 %v2034_v34  ;;  %v3302_v34 = vld [vmem:[#allocation9] ss:$0 sm:$0xff] }
 0xb1b   :  { %v2036_v35 = vpop.xlane.xlu0 %2035 }
 0xb1c   :  { %v2037_v36 = vsub.f32 %v2030_v30, %v2036_v35 }
 0xb1e   :  { %v2038_v37 = vmul.f32 1.442695, %v2037_v36 }
 0xb20   :  { %4130 = vpow2.f32 %v2038_v37 }
 0xb2a   :  { %v4131_v38 = vpop.eup %4130 }
 0xb2b   :  { %v2040_v39 = vsel %vm1106_vm3, %v4131_v38, 0.0 }
 0xb2c   :  { %2041 = vadd.xlane.f32.xlu1 %v2040_v39 }
 0xbb9   :  { %v2042_v47 = vpop.xlane.xlu1 %2041 }
 0xbba   :  { %4132 = vrcp.f32 %v2042_v47 }
 0xbc4   :  { %v4133_v48 = vpop.eup %4132 }
 0xbc5   :  { %v2044_v50 = vmul.f32 %v4133_v48, %v4131_v38  ;;  %v3305_v48 = vld [vmem:[#allocation11] ss:$0 sm:$0xff] }
 0xbc7   :  { %3633 = vmatmul.mubr.msk.f32.vlgmr.msra.gmra.mrb[10].mxu0 %vm1106_vm3, %v2044_v50 }
 0xbc8   :  { %3654 = vmatprep.mubr.msk.f32.mxu0 %vm4597_vm2, %v4596_v58  ;;  %3933 = vmatpush3.bf16.msra.mxu0 %v3932_v44 }
 0xbc9   :  { %3934 = vmatprep.subr.bf16.mxu0 %v4595_v1 }
 0xbcc   :  { %3936 = vmatpush3.bf16.msra.mxu0 %v3935_v2 }
 0xbcd   :  { %3668 = vmatprep.subr.mxu0 %v4596_v58 }
 0xc9a   :  { %v2114_v51 = vpop.f32.mrb[10].mxu0 }
 0xc9b   :  { %v3634_v52 = vpop.f32.mrb[11].mxu0  ;;  %3644 = vmatmul.mubr.msk.f32.vlgmr.msra.gmra.mrb[24].mxu1 %vm708_vm1, %v2114_v51 }
 0xc9c   :  { %3665 = vmatprep.mubr.msk.f32.mxu1 %vm4597_vm2, %v4596_v58  ;;  %3939 = vmatpush3.bf16.msra.mxu1 %v3938_v5  ;;  %v3277_v5 = vld [vmem:[%s5472_s10] ss:$0 sm:$0xff] }
 0xc9d   :  { %3940 = vmatprep.subr.bf16.mxu1 %v4595_v1 }
 0xca0   :  { %3942 = vmatpush3.bf16.msra.mxu1 %v3941_v26 }
 0xca1   :  { %3943 = vmatprep.subr.bf16.mxu1 %v4595_v1 }
 0xd6e   :  { %v2193_v54 = vpop.f32.mrb[24].mxu1 }
 0xd6f   :  { %v2194_v55 = vadd.f32 %v3292_v53, %v2193_v54  ;;  %v3645_v56 = vpop.f32.mrb[25].mxu1 }
 0xd71   :  { %v2197_v57 = vadd.f32 %v2194_v55, %v5136_v10 }
 0xd73   :  { %v2198_v59 = vsel %vm708_vm1, %v2197_v57, 0.0  ;;  %v2202_v60 = vmul.f32 %v2197_v57, %v2197_v57 }
 0xd74   :  { %2199 = vadd.xlane.f32.xlu0 %v2198_v59 }
 0xd75   :  { %v2203_v49 = vsel %vm708_vm1, %v2202_v60, 0.0 }
 0xd76   :  { %2204 = vadd.xlane.f32.xlu1 %v2203_v49 }
 0xe01   :  { %v2200_v6 = vpop.xlane.xlu0 %2199 }
 0xe02   :  { %v2201_v7 = vmul.f32 0.03125, %v2200_v6 }
 0xe03   :  { %v2205_v8 = vpop.xlane.xlu1 %2204 }
 0xe04   :  { %v2207_v9 = vmul.f32 %v2201_v7, %v2201_v7  ;;  %v2206_v10 = vmul.f32 0.03125, %v2205_v8  ;;  %v2209_v13 = vsub.f32 %v2197_v57, %v2201_v7  ;;  %v3307_v7 = vld [vmem:[#allocation12] ss:$0 sm:$0xff]  ;;  %v3301_v8 = vld [vmem:[#allocation8] ss:$0 sm:$0xff] }
 0xe06   :  { %v2208_v11 = vsub.f32 %v2206_v10, %v2207_v9  ;;  %v1579_v9 = vadd.f32 %v3277_v5, %v5156_v16 }
 0xe08   :  { %v2210_v12 = vadd.f32 1e-05, %v2208_v11  ;;  %v1584_v11 = vadd.f32 %v5154_v15, %v3277_v5 }
 0xe0a   :  { %4134 = vrsqrt.f32 %v2210_v12  ;;  %v5237_v16 = vadd.f32 %v1584_v11, %v5090_v33 }
 0xe0c   :  { %v1598_v33 = vmul.f32 %v5237_v16, %v5237_v16 }
 0xe0e   :  { %v1602_v26 = vsel %vm708_vm1, %v1598_v33, 0.0 }
 0xe14   :  { %v4135_v14 = vpop.eup %4134 }
 0xe15   :  { %v2212_v18 = vmul.f32 %v4135_v14, %v2209_v13 }
 0xe17   :  { %v2219_v20 = vmul.f32 %v3294_v17, %v2212_v18  ;;  %v5230_v17 = vadd.f32 %v1579_v9, %v5088_v31 }
 0xe19   :  { %v2226_v21 = vadd.f32 %v3295_v19, %v2219_v20  ;;  %v1597_v31 = vmul.f32 %v5230_v17, %v5230_v17 }
 0xe1b   :  { %3655 = vmatmul.mubr.msk.f32.vlgmr.msra.gmra.mrb[12].mxu0 %vm708_vm1, %v2226_v21  ;;  %v1599_v24 = vsel %vm708_vm1, %v1597_v31, 0.0 }
 0xe1c   :  { %3669 = vmatpush3.msk.msra.mxu0 %vm2434_vm5, %v540_v22  ;;  %3670 = vmatprep.mubr.msk.f32.mxu0 %vm4597_vm2, %v4596_v58 }
 0xe1d   :  { %3673 = vmatprep.subr.mxu0 %v4596_v58 }
 0xe1f   :  { %3671 = vmatmul.mubr.msk.f32.vlgmr.msra.gmra.mrb[14].mxu0 %vm2430_vm6, %v442_v23  ;;  %v1592_v23 = vsel %vm708_vm1, %v5237_v16, 0.0 }
 0xe20   :  { %3675 = vmatprep.mubr.msk.f32.mxu0 %vm4597_vm2, %v4596_v58  ;;  %3674 = vmatpush3.msra.mxu0 %v542_v27 }
 0xe21   :  { %3946 = vmatprep.subr.bf16.mxu0 %v4595_v1 }
 0xeee   :  { %v2302_v29 = vpop.f32.mrb[12].mxu0 }
 0xeef   :  { %v2303_v30 = vadd.f32 %v3296_v28, %v2302_v29  ;;  %v3656_v32 = vpop.f32.mrb[13].mxu0 }
 0xef1   :  { %v2306_v35 = vmax.f32 %v2303_v30, 0.0 }
 0xef2   :  { %v2504_v36 = vpop.f32.mrb[14].mxu0 }
 0xef3   :  { %v2505_v37 = vadd.f32 %v3302_v34, %v2504_v36  ;;  %3666 = vmatmul.mubr.msk.f32.vlgmr.msra.gmra.mrb[26].mxu1 %vm708_vm1, %v2306_v35  ;;  %v3672_v38 = vpop.f32.mrb[15].mxu0  ;;  %v549_v34 = vld [vmem:[%s5473_s20] sm:$0xff]  ;;  %v550_v35 = vld [vmem:[%s5473_s20 + $0x8] sm:$0xff]  ;;  %v551_v36 = vld [vmem:[%s5473_s20 + $0x10] sm:$0xff] }
 0xef4   :  { %3682 = vmatprep.mubr.msk.f32.mxu1 %vm4597_vm2, %v4596_v58  ;;  %3945 = vmatpush3.bf16.msra.mxu1 %v3944_v42  ;;  %v552_v38 = vld [vmem:[%s5473_s20 + $0x18] sm:$0xff]  ;;  %v3953_v42 = vpack.c.bf16 %v554_v41, %v553_v40 }
 0xef5   :  { %v2508_v39 = vmax.f32 %v2505_v37, 0.0  ;;  %3964 = vmatprep.subr.bf16.mxu1 %v4595_v1  ;;  %v3947_v37 = vpack.c.bf16 %v550_v35, %v549_v34  ;;  %v3281_v34 = vld [vmem:[%s5476_s15] ss:$0 sm:$0xff] }
 0xef7   :  { %3676 = vmatmul.mubr.msk.f32.vlgmr.msra.gmra.mrb[16].mxu0 %vm1106_vm3, %v2508_v39  ;;  %v3950_v39 = vpack.c.bf16 %v552_v38, %v551_v36  ;;  %v569_v38 = vld [vmem:[%s5474_s24 + $0x38] sm:$0xff] }
 0xef8   :  { %3709 = vmatprep.mubr.msk.f32.mxu0 %vm4597_vm2, %v4596_v58  ;;  %3948 = vmatpush3.bf16.msra.mxu0 %v3947_v37  ;;  %v568_v37 = vld [vmem:[%s5474_s24 + $0x30] sm:$0xff] }
 0xef9   :  { %3949 = vmatprep.subr.bf16.mxu0 %v4595_v1 }
 0xefc   :  { %3951 = vmatpush3.bf16.msra.mxu0 %v3950_v39 }
 0xefd   :  { %3952 = vmatprep.subr.bf16.mxu0 %v4595_v1 }
 0xf00   :  { %3954 = vmatpush3.bf16.msra.mxu0 %v3953_v42  ;;  %v3974_v42 = vpack.c.bf16 %v569_v38, %v568_v37  ;;  %v590_v37 = vld [vmem:[%s5478_s30] sm:$0xff]  ;;  %v591_v38 = vld [vmem:[%s5478_s30 + $0x8] sm:$0xff] }
 0xf01   :  { %3955 = vmatprep.subr.bf16.mxu0 %v4595_v1 }
 0xfc6   :  { %v2382_v45 = vpop.f32.mrb[26].mxu1 }
 0xfc7   :  { %v2383_v46 = vadd.f32 %v3298_v43, %v2382_v45  ;;  %v3667_v47 = vpop.f32.mrb[27].mxu1  ;;  %v555_v43 = vld [vmem:[%s5473_s20 + $0x30] sm:$0xff]  ;;  %v556_v45 = vld [vmem:[%s5473_s20 + $0x38] sm:$0xff] }
 0xfc9   :  { %v2386_v50 = vadd.f32 %v2383_v46, %v2226_v21  ;;  %v1589_v21 = vsel %vm708_vm1, %v5230_v17, 0.0  ;;  %v3956_v46 = vpack.c.bf16 %v556_v45, %v555_v43  ;;  %v570_v45 = vld [vmem:[%s5474_s24 + $0x40] sm:$0xff] }
 0xfca   :  { %v2584_v51 = vpop.f32.mrb[16].mxu0 }
 0xfcb   :  { %v2585_v52 = vadd.f32 %v3305_v48, %v2584_v51  ;;  %v3677_v53 = vpop.f32.mrb[17].mxu0  ;;  %v2387_v54 = vsel %vm708_vm1, %v2386_v50, 0.0  ;;  %v2391_v55 = vmul.f32 %v2386_v50, %v2386_v50  ;;  %3957 = vmatpush3.bf16.msra.mxu0 %v3956_v46  ;;  %v571_v46 = vld [vmem:[%s5474_s24 + $0x48] sm:$0xff] }
 0xfcc   :  { %2388 = vadd.xlane.f32.xlu0 %v2387_v54  ;;  %3958 = vmatprep.subr.bf16.mxu0 %v4595_v1 }
 0xfcd   :  { %v2588_v56 = vmax.f32 %v2585_v52, 0.0  ;;  %v2392_v57 = vsel %vm708_vm1, %v2391_v55, 0.0 }
 0xfce   :  { %2393 = vadd.xlane.f32.xlu1 %v2392_v57 }
 0xfcf   :  { %3683 = vmatmul.mubr.msk.f32.vlgmr.msra.gmra.mrb[28].mxu1 %vm618_vm0, %v2588_v56 }
 0xfd0   :  { %3736 = vmatprep.mubr.msk.f32.mxu1 %vm4597_vm2, %v4596_v58 }
0x1059   :  { %v2389_v59 = vpop.xlane.xlu0 %2388 }
0x105a   :  { %v2390_v60 = vmul.f32 0.03125, %v2389_v59 }
0x105b   :  { %v2394_v49 = vpop.xlane.xlu1 %2393 }
0x105c   :  { %v2396_v61 = vmul.f32 %v2390_v60, %v2390_v60  ;;  %v2395_v62 = vmul.f32 0.03125, %v2394_v49  ;;  %v2398_v2 = vsub.f32 %v2386_v50, %v2390_v60 }
0x105e   :  { %v2397_v44 = vsub.f32 %v2395_v62, %v2396_v61 }
0x1060   :  { %v2399_v63 = vadd.f32 1e-05, %v2397_v44 }
0x1062   :  { %4136 = vrsqrt.f32 %v2399_v63 }
0x106c   :  { %v4137_v0 = vpop.eup %4136 }
0x106d   :  { %v2401_v3 = vmul.f32 %v4137_v0, %v2398_v2  ;;  %v557_v2 = vld [vmem:[%s5473_s20 + $0x40] sm:$0xff] }
0x106f   :  { %v2408_v6 = vmul.f32 %v3300_v4, %v2401_v3  ;;  %v558_v3 = vld [vmem:[%s5473_s20 + $0x48] sm:$0xff] }
0x1070   :  { %v3959_v4 = vpack.c.bf16 %v558_v3, %v557_v2  ;;  %v572_v3 = vld [vmem:[%s5474_s24 + $0x50] sm:$0xff] }
0x1071   :  { %v2415_v14 = vadd.f32 %v3301_v8, %v2408_v6  ;;  %v560_v8 = vld [vmem:[%s5473_s20 + $0x58] sm:$0xff] }
0x1072   :  { %3960 = vmatpush3.bf16.msra.mxu0 %v3959_v4  ;;  %v573_v4 = vld [vmem:[%s5474_s24 + $0x58] sm:$0xff] }
0x1073   :  { %v2416_v15 = vsel %vm708_vm1, %v2415_v14, 0.0  ;;  %3961 = vmatprep.subr.bf16.mxu0 %v4595_v1  ;;  %v3309_v14 = vld [vmem:[#allocation14] ss:$0 sm:$0xff] }
0x1074   :  { %v2417_v22 = vrot.slane %v2416_v15, 4 }
0x1076   :  { %v2418_v25 = vadd.f32 %v2417_v22, %v2416_v15  ;;  %v563_v15 = vld [vmem:[%s5474_s24 + $0x8] sm:$0xff] }
0x1078   :  { %v2419_v27 = vrot.slane %v2418_v25, 2 }
0x107a   :  { %v2420_v28 = vadd.f32 %v2419_v27, %v2418_v25  ;;  %v566_v27 = vld [vmem:[%s5474_s24 + $0x20] sm:$0xff] }
0x107c   :  { %v2421_v29 = vrot.slane %v2420_v28, 1 }
0x107e   :  { %v2422_v30 = vadd.f32 %v2421_v29, %v2420_v28  ;;  %v567_v28 = vld [vmem:[%s5474_s24 + $0x28] sm:$0xff] }
0x107f   :  { %v3971_v36 = vpack.c.bf16 %v567_v28, %v566_v27  ;;  %v583_v27 = vld [vmem:[%s5477_s3 + $0x30] sm:$0xff]  ;;  %v584_v28 = vld [vmem:[%s5477_s3 + $0x38] sm:$0xff] }
0x1080   :  { %v2423_v32 = vmul.f32 0.125, %v2422_v30 }
0x10a2   :  { %v2664_v10 = vpop.f32.mrb[28].mxu1 }
0x10a3   :  { %v5227_v12 = vadd.f32 %v3307_v7, %v2664_v10  ;;  %v3684_v13 = vpop.f32.mrb[29].mxu1  ;;  %v559_v7 = vld [vmem:[%s5473_s20 + $0x50] sm:$0xff] }
0x10a4   :  { %v3962_v9 = vpack.c.bf16 %v560_v8, %v559_v7 }
0x10a5   :  { %v2669_v18 = vsel %vm2668_vm7, %v5227_v12, 0.0  ;;  %v2673_v19 = vmul.f32 %v5227_v12, %v5227_v12 }
0x10a6   :  { %2670 = vadd.xlane.f32.xlu0 %v2669_v18  ;;  %3963 = vmatpush3.bf16.msra.mxu0 %v3962_v9  ;;  %v3310_v18 = vld [vmem:[#allocation15] ss:$0 sm:$0xff] }
0x10a7   :  { %v2674_v20 = vsel %vm2668_vm7, %v2673_v19, 0.0  ;;  %3982 = vmatprep.subr.bf16.mxu0 %v4595_v1 }
0x10a8   :  { %2675 = vadd.xlane.f32.xlu1 %v2674_v20  ;;  %v562_v20 = vld [vmem:[%s5474_s24] sm:$0xff] }
0x10a9   :  { %v3965_v22 = vpack.c.bf16 %v563_v15, %v562_v20 }
0x10aa   :  { %1590 = vadd.xlane.f32.xlu0 %v1589_v21  ;;  %v564_v21 = vld [vmem:[%s5474_s24 + $0x10] sm:$0xff] }
0x10ab   :  { %3966 = vmatpush3.bf16.msra.mxu1 %v3965_v22 }
0x10ac   :  { %1593 = vadd.xlane.f32.xlu1 %v1592_v23  ;;  %v565_v23 = vld [vmem:[%s5474_s24 + $0x18] sm:$0xff]  ;;  %3967 = vmatprep.subr.bf16.mxu1 %v4595_v1 }
0x10ae   :  { %1600 = vadd.xlane.f32.xlu0 %v1599_v24  ;;  %v3968_v24 = vpack.c.bf16 %v565_v23, %v564_v21  ;;  %v577_v21 = vld [vmem:[%s5477_s3] sm:$0xff]  ;;  %v579_v23 = vld [vmem:[%s5477_s3 + $0x10] sm:$0xff] }
0x10b0   :  { %1603 = vadd.xlane.f32.xlu1 %v1602_v26  ;;  %v3280_v26 = vld [vmem:[%s5475_s11] ss:$0 sm:$0xff]  ;;  %3969 = vmatpush3.bf16.msra.mxu1 %v3968_v24 }
0x10b1   :  { %3970 = vmatprep.subr.bf16.mxu1 %v4595_v1  ;;  %v581_v24 = vld [vmem:[%s5477_s3 + $0x20] sm:$0xff] }
0x10b4   :  { %3972 = vmatpush3.bf16.msra.mxu1 %v3971_v36 }
0x10b5   :  { %3973 = vmatprep.subr.bf16.mxu1 %v4595_v1 }
0x10b8   :  { %3975 = vmatpush3.bf16.msra.mxu1 %v3974_v42  ;;  %v594_v42 = vld [vmem:[%s5478_s30 + $0x20] sm:$0xff] }
0x10b9   :  { %3976 = vmatprep.subr.bf16.mxu1 %v4595_v1 }
0x10c4   :  { %2705 = vrot.lane.b32.xlu0 %v2423_v32, %s4598_s29 }
0x1133   :  { %v2671_v47 = vpop.xlane.xlu0 %2670 }
0x1134   :  { %v2672_v48 = vmul.f32 0.03125, %v2671_v47 }
0x1135   :  { %v2676_v50 = vpop.xlane.xlu1 %2675 }
0x1136   :  { %v2678_v51 = vmul.f32 %v2672_v48, %v2672_v48  ;;  %v2677_v52 = vmul.f32 0.03125, %v2676_v50  ;;  %v2680_v11 = vsub.f32 %v5227_v12, %v2672_v48 }
0x1137   :  { %v1591_v53 = vpop.xlane.xlu0 %1590 }
0x1138   :  { %v2679_v54 = vsub.f32 %v2677_v52, %v2678_v51  ;;  %v1595_v55 = vmul.f32 0.03125, %v1591_v53  ;;  %v3977_v51 = vpack.c.bf16 %v571_v46, %v570_v45  ;;  %v596_v46 = vld [vmem:[%s5478_s30 + $0x30] sm:$0xff] }
0x1139   :  { %v1594_v56 = vpop.xlane.xlu1 %1593 }
0x113a   :  { %v2681_v57 = vadd.f32 1e-05, %v2679_v54  ;;  %v1596_v59 = vmul.f32 0.03125, %v1594_v56  ;;  %v1607_v49 = vmul.f32 %v1595_v55, %v1595_v55  ;;  %v1611_v33 = vsub.f32 %v5230_v17, %v1595_v55  ;;  %3978 = vmatpush3.bf16.msra.mxu1 %v3977_v51  ;;  %v599_v51 = vld [vmem:[%s5478_s30 + $0x48] sm:$0xff] }
0x113b   :  { %v1601_v60 = vpop.xlane.xlu0 %1600  ;;  %3979 = vmatprep.subr.bf16.mxu1 %v4595_v1 }
0x113c   :  { %4138 = vrsqrt.f32 %v2681_v57  ;;  %v1605_v61 = vmul.f32 0.03125, %v1601_v60  ;;  %v1608_v44 = vmul.f32 %v1596_v59, %v1596_v59  ;;  %v1612_v29 = vsub.f32 %v5237_v16, %v1596_v59 }
0x113d   :  { %v1604_v62 = vpop.xlane.xlu1 %1603 }
0x113e   :  { %v1609_v63 = vsub.f32 %v1605_v61, %v1607_v49  ;;  %v1606_v0 = vmul.f32 0.03125, %v1604_v62 }
0x1140   :  { %v1613_v5 = vadd.f32 1e-05, %v1609_v63  ;;  %v1610_v6 = vsub.f32 %v1606_v0, %v1608_v44  ;;  %v2706_v63 = vpop.permute.xlu0 %2705 }
0x1142   :  { %4140 = vrsqrt.f32 %v1613_v5  ;;  %v1614_v10 = vadd.f32 1e-05, %v1610_v6  ;;  %v3980_v5 = vpack.c.bf16 %v573_v4, %v572_v3  ;;  %v3311_v6 = vld [vmem:[#allocation17] ss:$0 sm:$0xff]  ;;  %v601_v4 = vld [vmem:[%s5478_s30 + $0x58] sm:$0xff] }
0x1143   :  { %v600_v3 = vld [vmem:[%s5478_s30 + $0x50] sm:$0xff] }
0x1144   :  { %4142 = vrsqrt.f32 %v1614_v10  ;;  %3981 = vmatpush3.bf16.msra.mxu1 %v3980_v5  ;;  %v3313_v10 = vld [vmem:[#allocation18] ss:$0 sm:$0xff]  ;;  %v4016_v5 = vpack.c.bf16 %v601_v4, %v600_v3 }
0x1145   :  { %4000 = vmatprep.subr.bf16.mxu1 %v4595_v1 }
0x1146   :  { %v4139_v13 = vpop.eup %4138 }
0x1147   :  { %v2683_v19 = vmul.f32 %v4139_v13, %v2680_v11 }
0x1149   :  { %v2690_v31 = vmul.f32 %v3309_v14, %v2683_v19 }
0x114b   :  { %v2697_v12 = vadd.f32 %v3310_v18, %v2690_v31  ;;  %v578_v31 = vld [vmem:[%s5477_s3 + $0x8] sm:$0xff] }
0x114c   :  { %v4141_v25 = vpop.eup %4140  ;;  %v3983_v22 = vpack.c.bf16 %v578_v31, %v577_v21  ;;  %v605_v21 = vld [vmem:[%s4903_s14] sm:$0xff]  ;;  %v606_v31 = vld [vmem:[%s4903_s14 + $0x8] sm:$0xff] }
0x114d   :  { %v1617_v30 = vmul.f32 %v4141_v25, %v1611_v33  ;;  %2711 = vrot.lane.b32.xlu1 %v2697_v12, %s4599_s0  ;;  %v580_v33 = vld [vmem:[%s5477_s3 + $0x18] sm:$0xff]  ;;  %v582_v25 = vld [vmem:[%s5477_s3 + $0x28] sm:$0xff] }
0x114e   :  { %v4143_v32 = vpop.eup %4142  ;;  %v3986_v12 = vpack.c.bf16 %v580_v33, %v579_v23  ;;  %v607_v23 = vld [vmem:[%s4903_s14 + $0x10] sm:$0xff]  ;;  %v608_v33 = vld [vmem:[%s4903_s14 + $0x18] sm:$0xff] }
0x114f   :  { %v1625_v17 = vmul.f32 %v3280_v26, %v1617_v30  ;;  %v1618_v35 = vmul.f32 %v4143_v32, %v1612_v29  ;;  %v3992_v29 = vpack.c.bf16 %v584_v28, %v583_v27  ;;  %v585_v30 = vld [vmem:[%s5477_s3 + $0x40] sm:$0xff]  ;;  %v586_v32 = vld [vmem:[%s5477_s3 + $0x48] sm:$0xff]  ;;  %v611_v27 = vld [vmem:[%s4903_s14 + $0x30] sm:$0xff] }
0x1150   :  { %v612_v28 = vld [vmem:[%s4903_s14 + $0x38] sm:$0xff] }
0x1151   :  { %v1633_v39 = vadd.f32 %v3281_v34, %v1625_v17  ;;  %v1626_v40 = vmul.f32 %v3280_v26, %v1618_v35  ;;  %v3989_v26 = vpack.c.bf16 %v582_v25, %v581_v24  ;;  %v587_v17 = vld [vmem:[%s5477_s3 + $0x50] sm:$0xff]  ;;  %v588_v35 = vld [vmem:[%s5477_s3 + $0x58] sm:$0xff]  ;;  %v609_v24 = vld [vmem:[%s4903_s14 + $0x20] sm:$0xff] }
0x1152   :  { %v3998_v36 = vpack.c.bf16 %v588_v35, %v587_v17  ;;  %v610_v25 = vld [vmem:[%s4903_s14 + $0x28] sm:$0xff]  ;;  %v615_v17 = vld [vmem:[%s4903_s14 + $0x50] sm:$0xff]  ;;  %v616_v35 = vld [vmem:[%s4903_s14 + $0x58] sm:$0xff] }
0x1153   :  { %v1634_v41 = vadd.f32 %v3281_v34, %v1626_v40  ;;  %v1635_v16 = vsel %vm708_vm1, %v1633_v39, 0.0  ;;  %v3995_v34 = vpack.c.bf16 %v586_v32, %v585_v30  ;;  %v592_v39 = vld [vmem:[%s5478_s30 + $0x10] sm:$0xff]  ;;  %v4001_v40 = vpack.c.bf16 %v591_v38, %v590_v37  ;;  %v613_v30 = vld [vmem:[%s4903_s14 + $0x40] sm:$0xff]  ;;  %v614_v32 = vld [vmem:[%s4903_s14 + $0x48] sm:$0xff] }
0x1154   :  { %v1636_v43 = vrot.slane %v1635_v16, 4 }
0x1155   :  { %v1642_v47 = vsel %vm708_vm1, %v1634_v41, 0.0  ;;  %v593_v41 = vld [vmem:[%s5478_s30 + $0x18] sm:$0xff] }
0x1156   :  { %v1637_v48 = vadd.f32 %v1636_v43, %v1635_v16  ;;  %v1643_v50 = vrot.slane %v1642_v47, 4  ;;  %v4004_v16 = vpack.c.bf16 %v593_v41, %v592_v39  ;;  %v595_v43 = vld [vmem:[%s5478_s30 + $0x28] sm:$0xff] }
0x1157   :  { %v4007_v45 = vpack.c.bf16 %v595_v43, %v594_v42 }
0x1158   :  { %v1638_v52 = vrot.slane %v1637_v48, 2  ;;  %v1644_v53 = vadd.f32 %v1643_v50, %v1642_v47  ;;  %v597_v47 = vld [vmem:[%s5478_s30 + $0x38] sm:$0xff]  ;;  %v598_v50 = vld [vmem:[%s5478_s30 + $0x40] sm:$0xff] }
0x115a   :  { %v1639_v54 = vadd.f32 %v1638_v52, %v1637_v48  ;;  %v1645_v55 = vrot.slane %v1644_v53, 2  ;;  %v4010_v48 = vpack.c.bf16 %v597_v47, %v596_v46  ;;  %v4013_v52 = vpack.c.bf16 %v599_v51, %v598_v50  ;;  %v3321_v46 = vld [vmem:[#allocation26] ss:$0 sm:$0xff]  ;;  %v3323_v51 = vld [vmem:[#allocation3] ss:$0 sm:$0xff] }
0x115c   :  { %v1640_v56 = vrot.slane %v1639_v54, 1  ;;  %v1646_v57 = vadd.f32 %v1645_v55, %v1644_v53 }
0x115e   :  { %v1641_v59 = vadd.f32 %v1640_v56, %v1639_v54  ;;  %v1647_v60 = vrot.slane %v1646_v57, 1 }
0x1160   :  { %v1648_v49 = vadd.f32 %v1647_v60, %v1646_v57  ;;  %v1650_v61 = vmul.f32 0.125, %v1641_v59 }
0x1162   :  { %v1651_v62 = vmul.f32 0.125, %v1648_v49 }
0x1164   :  { %v2701_v44 = vsel %vm2700_vm8, %v1651_v62, %v1650_v61  ;;  %v3315_v62 = vld [vmem:[#allocation20] ss:$0 sm:$0xff] }
0x1165   :  { %2703 = vst.msk [vmem:[#allocation2] sm:$0x3] %vm2668_vm7, %v2701_v44 }
0x1166   :  { %2709 = vst.msk [vmem:[#allocation2] sm:$0x3] %vm2708_vm9, %v2706_v63  ;;  %v3316_v63 = vld [vmem:[#allocation21] ss:$0 sm:$0xff] }
0x11bf   :  { %v2712_v0 = vpop.permute.xlu1 %2711 }
0x11c0   :  { %2715 = vst.msk [vmem:[#allocation2] sm:$0x3] %vm2714_vm10, %v2712_v0 }
0x11c7   :  { %v2716_v2 = vld [vmem:[#allocation2] sm:$0x3] }
0x11c8   :  { %3710 = vmatmul.mubr.msk.f32.vlgmr.msra.gmra.mrb[18].mxu0 %vm2723_vm11, %v2716_v2 }
0x11c9   :  { %3763 = vmatprep.mubr.msk.f32.mxu0 %vm4597_vm2, %v4596_v58  ;;  %3984 = vmatpush3.bf16.msra.mxu0 %v3983_v22  ;;  %v4019_v22 = vpack.c.bf16 %v606_v31, %v605_v21 }
0x11ca   :  { %3985 = vmatprep.subr.bf16.mxu0 %v4595_v1 }
0x11cd   :  { %3987 = vmatpush3.bf16.msra.mxu0 %v3986_v12  ;;  %v4022_v12 = vpack.c.bf16 %v608_v33, %v607_v23 }
0x11ce   :  { %3988 = vmatprep.subr.bf16.mxu0 %v4595_v1 }
0x11d1   :  { %3990 = vmatpush3.bf16.msra.mxu0 %v3989_v26  ;;  %v4025_v26 = vpack.c.bf16 %v610_v25, %v609_v24 }
0x11d2   :  { %3991 = vmatprep.subr.bf16.mxu0 %v4595_v1 }
0x11d5   :  { %3993 = vmatpush3.bf16.msra.mxu0 %v3992_v29  ;;  %v4028_v29 = vpack.c.bf16 %v612_v28, %v611_v27 }
0x11d6   :  { %3994 = vmatprep.subr.bf16.mxu0 %v4595_v1 }
0x11d9   :  { %3996 = vmatpush3.bf16.msra.mxu0 %v3995_v34  ;;  %v4031_v34 = vpack.c.bf16 %v614_v32, %v613_v30 }
0x11da   :  { %3997 = vmatprep.subr.bf16.mxu0 %v4595_v1 }
0x11dd   :  { %3999 = vmatpush3.bf16.msra.mxu0 %v3998_v36  ;;  %v4034_v36 = vpack.c.bf16 %v616_v35, %v615_v17 }
0x11de   :  { %4018 = vmatprep.subr.bf16.mxu0 %v4595_v1 }
0x129b   :  { %v2793_v7 = vpop.f32.mrb[18].mxu0 }
0x129c   :  { %v2794_v8 = vadd.f32 %v3311_v6, %v2793_v7  ;;  %v3711_v9 = vpop.f32.mrb[19].mxu0  ;;  %v3317_v6 = vld [vmem:[#allocation23] ss:$0 sm:$0xff] }
0x129e   :  { %3737 = vmatmul.mubr.msk.f32.vlgmr.msra.gmra.mrb[30].mxu1 %vm2723_vm11, %v2794_v8 }
0x129f   :  { %3790 = vmatprep.mubr.msk.f32.mxu1 %vm4597_vm2, %v4596_v58  ;;  %4002 = vmatpush3.bf16.msra.mxu1 %v4001_v40 }
0x12a0   :  { %4003 = vmatprep.subr.bf16.mxu1 %v4595_v1 }
0x12a3   :  { %4005 = vmatpush3.bf16.msra.mxu1 %v4004_v16 }
0x12a4   :  { %4006 = vmatprep.subr.bf16.mxu1 %v4595_v1 }
0x12a7   :  { %4008 = vmatpush3.bf16.msra.mxu1 %v4007_v45 }
0x12a8   :  { %4009 = vmatprep.subr.bf16.mxu1 %v4595_v1 }
0x12ab   :  { %4011 = vmatpush3.bf16.msra.mxu1 %v4010_v48  ;;  %v3322_v48 = vld [vmem:[#allocation27] ss:$0 sm:$0xff] }
0x12ac   :  { %4012 = vmatprep.subr.bf16.mxu1 %v4595_v1 }
0x12af   :  { %4014 = vmatpush3.bf16.msra.mxu1 %v4013_v52 }
0x12b0   :  { %4015 = vmatprep.subr.bf16.mxu1 %v4595_v1 }
0x12b3   :  { %4017 = vmatpush3.bf16.msra.mxu1 %v4016_v5 }
0x1371   :  { %v2872_v11 = vpop.f32.mrb[30].mxu1 }
0x1372   :  { %v2873_v13 = vadd.f32 %v3313_v10, %v2872_v11  ;;  %v3738_v14 = vpop.f32.mrb[31].mxu1  ;;  %v3319_v11 = vld [vmem:[#allocation24] ss:$0 sm:$0xff] }
0x1374   :  { %v5301_v18 = vadd.f32 %v2873_v13, %v2716_v2 }
0x1376   :  { %v2878_v19 = vsel %vm2877_vm12, %v5301_v18, 0.0  ;;  %v2883_v20 = vmul.f32 %v5301_v18, %v5301_v18 }
0x1377   :  { %2879 = vadd.xlane.f32.xlu1 %v2878_v19 }
0x1378   :  { %v2884_v15 = vsel %vm2877_vm12, %v2883_v20, 0.0 }
0x1379   :  { %2885 = vadd.xlane.f32.xlu0 %v2884_v15 }
0x1404   :  { %v2880_v53 = vpop.xlane.xlu1 %2879 }
0x1405   :  { %v2882_v54 = vmul.f32 0.010416667, %v2880_v53 }
0x1406   :  { %v2886_v55 = vpop.xlane.xlu0 %2885 }
0x1407   :  { %v2888_v56 = vmul.f32 %v2882_v54, %v2882_v54  ;;  %v2887_v57 = vmul.f32 0.010416667, %v2886_v55  ;;  %v2890_v49 = vsub.f32 %v5301_v18, %v2882_v54 }
0x1409   :  { %v2889_v59 = vsub.f32 %v2887_v57, %v2888_v56 }
0x140b   :  { %v2891_v60 = vadd.f32 1e-05, %v2889_v59 }
0x140d   :  { %4144 = vrsqrt.f32 %v2891_v60 }
0x1417   :  { %v4145_v61 = vpop.eup %4144 }
0x1418   :  { %v2893_v44 = vmul.f32 %v4145_v61, %v2890_v49 }
0x141a   :  { %v2900_v0 = vmul.f32 %v3315_v62, %v2893_v44 }
0x141c   :  { %v2907_v2 = vadd.f32 %v3316_v63, %v2900_v0 }
0x141e   :  { %3764 = vmatmul.mubr.msk.f32.vlgmr.msra.gmra.mrb[20].mxu0 %vm2723_vm11, %v2907_v2 }
0x141f   :  { %3817 = vmatprep.mubr.msk.f32.mxu0 %vm4597_vm2, %v4596_v58  ;;  %4020 = vmatpush3.bf16.msra.mxu0 %v4019_v22 }
0x1420   :  { %4021 = vmatprep.subr.bf16.mxu0 %v4595_v1 }
0x1423   :  { %4023 = vmatpush3.bf16.msra.mxu0 %v4022_v12 }
0x1424   :  { %4024 = vmatprep.subr.bf16.mxu0 %v4595_v1 }
0x1427   :  { %4026 = vmatpush3.bf16.msra.mxu0 %v4025_v26 }
0x1428   :  { %4027 = vmatprep.subr.bf16.mxu0 %v4595_v1 }
0x142b   :  { %4029 = vmatpush3.bf16.msra.mxu0 %v4028_v29 }
0x142c   :  { %4030 = vmatprep.subr.bf16.mxu0 %v4595_v1 }
0x142f   :  { %4032 = vmatpush3.bf16.msra.mxu0 %v4031_v34 }
0x1430   :  { %4033 = vmatprep.subr.bf16.mxu0 %v4595_v1 }
0x1433   :  { %4035 = vmatpush3.bf16.msra.mxu0 %v4034_v36 }
0x14f1   :  { %v2983_v7 = vpop.f32.mrb[20].mxu0 }
0x14f2   :  { %v2984_v8 = vadd.f32 %v3317_v6, %v2983_v7  ;;  %v3765_v9 = vpop.f32.mrb[21].mxu0 }
0x14f4   :  { %v2987_v10 = vmax.f32 %v2984_v8, 0.0 }
0x14f6   :  { %3791 = vmatmul.mubr.msk.f32.vlgmr.msra.gmra.mrb[32].mxu1 %vm2723_vm11, %v2987_v10 }
0x15c9   :  { %v3063_v13 = vpop.f32.mrb[32].mxu1 }
0x15ca   :  { %v3064_v14 = vadd.f32 %v3319_v11, %v3063_v13  ;;  %v3792_v18 = vpop.f32.mrb[33].mxu1 }
0x15cc   :  { %v3067_v58 = vadd.f32 %v3064_v14, %v2907_v2 }
0x15ce   :  { %v3068_v19 = vsel %vm2877_vm12, %v3067_v58, 0.0  ;;  %v3072_v20 = vmul.f32 %v3067_v58, %v3067_v58 }
0x15cf   :  { %3069 = vadd.xlane.f32.xlu0 %v3068_v19 }
0x15d0   :  { %v3073_v15 = vsel %vm2877_vm12, %v3072_v20, 0.0 }
0x15d1   :  { %3074 = vadd.xlane.f32.xlu1 %v3073_v15 }
0x165c   :  { %v3070_v37 = vpop.xlane.xlu0 %3069 }
0x165d   :  { %v3071_v38 = vmul.f32 0.010416667, %v3070_v37 }
0x165e   :  { %v3075_v39 = vpop.xlane.xlu1 %3074 }
0x165f   :  { %v3077_v40 = vmul.f32 %v3071_v38, %v3071_v38  ;;  %v3076_v41 = vmul.f32 0.010416667, %v3075_v39  ;;  %v3079_v43 = vsub.f32 %v3067_v58, %v3071_v38 }
0x1661   :  { %v3078_v16 = vsub.f32 %v3076_v41, %v3077_v40 }
0x1663   :  { %v3080_v42 = vadd.f32 1e-05, %v3078_v16 }
0x1665   :  { %4146 = vrsqrt.f32 %v3080_v42 }
0x166f   :  { %v4147_v45 = vpop.eup %4146 }
0x1670   :  { %v3082_v47 = vmul.f32 %v4147_v45, %v3079_v43 }
0x1672   :  { %v3089_v50 = vmul.f32 %v3321_v46, %v3082_v47 }
0x1674   :  { %v3096_v1 = vadd.f32 %v3322_v48, %v3089_v50 }
0x1676   :  { %3818 = vmatmul.mubr.msk.f32.vlgmr.msra.gmra.mrb[22].mxu0 %vm2723_vm11, %v3096_v1 }
0x1749   :  { %v3172_v52 = vpop.f32.mrb[22].mxu0 }
0x174a   :  { %v3173_v53 = vadd.f32 %v3323_v51, %v3172_v52  ;;  %v3819_v54 = vpop.f32.mrb[23].mxu0 }
0x174c   :  { %3177 = vst.msk [vmem:[%s4911_s19] sm:$0x3] %vm3176_vm13, %v3173_v53 }
0x174d   :  { %3182 = vsyncpa [#allocation5], 1 }
0x174e   :  { %3183 = vsyncpa [#allocation7], 1 }
0x174f   :  { %3184 = vsyncpa [#allocation10], 1 }
0x1750   :  { %3185 = vsyncpa [#allocation13], 1 }
0x1751   :  { %3186 = vsyncpa [#allocation16], 1 }
0x1752   :  { %3187 = vsyncpa [#allocation19], 1 }
0x1753   :  { %3188 = vsyncpa [#allocation22], 1 }
0x1754   :  { %3189 = vsyncpa [#allocation25], 1 }
0x1755   :  { %3190 = vsyncpa [#allocation28], 1 }

</bundles_post_ra>
